<compile_context>
chip_gen: v5e
topology: v5e:2x2
jax: 0.10.0
libtpu: 0.0.40
codegen_flags: <defaults>
</compile_context>

<pallas_src>
import numpy as np

import jax
import jax.numpy as jnp
from jax.experimental import pallas as pl
from jax.experimental.pallas import tpu as pltpu


# ---------------------------------------------------------------------------
# Fused Pallas kernel: whole network for one batch tile
# ---------------------------------------------------------------------------

def _fused_cnn_kernel(xw_ref, a1_ref, b1_ref, a2_ref, b2_ref,
                      wf1_ref, bf1_ref, wf2_ref, bf2_ref, o_ref):
    """xw_ref : (16*TB, 54) bf16  conv1 windows, rows ordered (parity, ph, batch)
       a1_ref : (54, 256)   bf16  conv1 banded matrix, cols = parity*128 + pw*16 + c
       b1_ref : (1, 128)    f32   conv1 bias in pooled layout (pw*16 + c)
       a2_ref : (3, 128, 256) bf16 conv2 banded matrices (one per kernel row)
       b2_ref : (1, 128)    f32   conv2 bias in pooled layout (pw*32 + co)
       wf1_ref: (4, 128, 128) bf16 fc1 split per pooled conv2 row (flatten perm folded)
       bf1_ref: (1, 128)    f32
       wf2_ref: (1, 128)    f32   fc2 weight row (VPU)
       bf2_ref: (1, 1)      f32
       o_ref  : (TB, 1)     f32
    """
    f32, bf16 = jnp.float32, jnp.bfloat16
    TB = o_ref.shape[0]

    # ---- conv1: one tall MXU matmul over all 16 output rows --------------------
    z1 = jnp.dot(xw_ref[...], a1_ref[...], preferred_element_type=f32)   # (16TB,256)
    zr = jnp.maximum(z1[:8 * TB], z1[8 * TB:])          # 2x2 pool over rows (8TB, 256)
    zc = jnp.maximum(zr[:, :128], zr[:, 128:])          # 2x2 pool over cols (8TB, 128)
    # bias is identical across the 4 pooled candidates and ReLU is monotone, so
    # (bias, relu) commute with the max-pool -> apply them on the pooled tensor.
    p1 = jnp.maximum(zc + b1_ref[...], 0.0).astype(bf16)                 # (8TB, 128)

    # ---- conv2: 3 banded matmuls (one per kernel row), zero height padding -----
    zpad = jnp.zeros((TB, 128), bf16)
    p1p = jnp.concatenate([zpad, p1, zpad], axis=0)                      # (10TB, 128)
    z2 = (jnp.dot(p1p[0:8 * TB],        a2_ref[0], preferred_element_type=f32) +
          jnp.dot(p1p[TB:9 * TB],       a2_ref[1], preferred_element_type=f32) +
          jnp.dot(p1p[2 * TB:10 * TB],  a2_ref[2], preferred_element_type=f32))
    # z2: (8TB, 256), rows ordered (output row h, batch), cols parity-packed.

    # ---- relu+pool per pooled row, fc1 as 4 accumulated K=128 matmuls ----------
    hacc = jnp.zeros((TB, 128), f32)
    for ph in range(4):
        blk = jnp.maximum(z2[(2 * ph) * TB:(2 * ph + 1) * TB],
                          z2[(2 * ph + 1) * TB:(2 * ph + 2) * TB])       # rows  (TB,256)
        blk = jnp.maximum(blk[:, :128], blk[:, 128:])                    # cols  (TB,128)
        blk = jnp.maximum(blk + b2_ref[...], 0.0).astype(bf16)           # bias + relu
        hacc = hacc + jnp.dot(blk, wf1_ref[ph], preferred_element_type=f32)
    h = jnp.maximum(hacc + bf1_ref[...], 0.0)                            # (TB, 128) f32

    # ---- fc2 (128 -> 1): VPU multiply + lane reduction --------------------------
    o_ref[...] = jnp.sum(h * wf2_ref[...], axis=1, keepdims=True) + bf2_ref[...]


# ---------------------------------------------------------------------------
# Wrapper
# ---------------------------------------------------------------------------

def _round_up(x, m):
    return (x + m - 1) // m * m


def cnn2d_forward(x_nchw, prep):
    """x_nchw: (B, 1, 16, 16) float32 -> (B, 1) float32."""
    B = x_nchw.shape[0]
    # Batch tile: multiple of 16 (bf16 sublane tile), >= 2 grid steps for B > 16 so
    # the "parallel" axis shards across v7x's two TensorCores; capped at 256 to stay
    # well inside the 32 MiB scoped VMEM while amortizing per-step overhead.
    TB = min(256, max(16, _round_up((B + 1) // 2, 16)))
    Bp = _round_up(B, TB)
    ntiles = Bp // TB

    x = x_nchw.reshape(B, 16, 16).astype(jnp.float32)
    xp = jnp.pad(x, ((0, Bp - B), (1, 1), (1, 1)))                     # (Bp, 18, 18)

    # Pre-concatenate the conv1 windows host-side: one 54-wide row per conv1 output
    # row, with output rows ordered (parity, ph) so 2x2 row pooling in the kernel is
    # a max of two contiguous M-halves.
    order = [0, 2, 4, 6, 8, 10, 12, 14, 1, 3, 5, 7, 9, 11, 13, 15]
    win = jnp.stack([xp[:, h:h + 3, :].reshape(Bp, 54) for h in order], axis=0)
    win = win.reshape(16, ntiles, TB, 54).transpose(1, 0, 2, 3)
    xw = win.reshape(ntiles * 16 * TB, 54).astype(jnp.bfloat16)

    const = lambda *shape: pl.BlockSpec(shape, lambda i: (0,) * len(shape))

    out = pl.pallas_call(
        _fused_cnn_kernel,
        out_shape=jax.ShapeDtypeStruct((Bp, 1), jnp.float32),
        grid_spec=pltpu.PrefetchScalarGridSpec(
            num_scalar_prefetch=0,
            grid=(ntiles,),
            in_specs=[
                pl.BlockSpec((16 * TB, 54), lambda i: (i, 0)),   # streamed conv1 windows
                const(54, 256),                                  # conv1 banded matrix
                const(1, 128),                                   # conv1 bias (pooled)
                const(3, 128, 256),                              # conv2 banded matrices
                const(1, 128),                                   # conv2 bias (pooled)
                const(4, 128, 128),                              # fc1 (perm folded)
                const(1, 128),                                   # fc1 bias
                const(1, 128),                                   # fc2 weight row
                const(1, 1),                                     # fc2 bias
            ],
            out_specs=pl.BlockSpec((TB, 1), lambda i: (i, 0)),
        ),
        compiler_params=pltpu.CompilerParams(
            dimension_semantics=("parallel",),          # shard batch tiles over TCs
            vmem_limit_bytes=32 * 1024 * 1024,
        ),
    )(xw, prep["A1"], prep["b1"], prep["A2"], prep["b2"],
      prep["Wf1"], prep["bf1"], prep["Wf2"], prep["bf2"])

    return out[:B]


# ---------------------------------------------------------------------------
# One-time host-side weight preparation (banded matrices, pool-parity packing,
# folded NCHW-flatten permutation).  Pure numpy; runs once.
# ---------------------------------------------------------------------------

def prepare_params(p):
    f32 = np.float32

    # conv1: A1[kh*18 + wp, parity*128 + pw*16 + c] = w1[c, 0, kh, wp - (2*pw+parity)]
    w1 = np.asarray(p["w_conv1"], f32)                 # (16, 1, 3, 3)  (c, 1, kh, kw)
    A1 = np.zeros((3, 18, 2, 8, 16), f32)              # (kh, wp, parity, pw, c)
    for kh in range(3):
        for kw in range(3):
            for w in range(16):
                A1[kh, w + kw, w % 2, w // 2, :] = w1[:, 0, kh, kw]
    A1 = A1.reshape(54, 256)

    # conv2 (per kernel row kh): rows index pooled conv1 lanes (pw_in*16 + ci),
    # cols are parity-packed (parity*128 + pw_out*32 + co).
    w2 = np.asarray(p["w_conv2"], f32)                 # (32, 16, 3, 3)  (co, ci, kh, kw)
    A2 = np.zeros((3, 8, 16, 2, 4, 32), f32)           # (kh, pw_in, ci, parity, pw_out, co)
    for kh in range(3):
        for w in range(8):
            for kw in range(3):
                pw_in = w + kw - 1
                if 0 <= pw_in <= 7:
                    A2[kh, pw_in, :, w % 2, w // 2, :] = w2[:, :, kh, kw].T
    A2 = A2.reshape(3, 128, 256)

    # fc1: fold PyTorch's NCHW flatten (feat = co*16 + ph*4 + pw) into per-pooled-row
    # weight blocks whose rows follow the kernel's (pw*32 + co) lane layout.
    wf1 = np.asarray(p["w_fc1"], f32)                  # (128, 512)  torch (out, in)
    wt = wf1.T.reshape(32, 4, 4, 128)                  # (co, ph, pw, out)
    Wf1 = np.transpose(wt, (1, 2, 0, 3)).reshape(4, 128, 128)

    b1 = np.tile(np.asarray(p["b_conv1"], f32), 8).reshape(1, 128)   # [pw*16 + c]
    b2 = np.tile(np.asarray(p["b_conv2"], f32), 4).reshape(1, 128)   # [pw*32 + co]

    bf16 = jnp.bfloat16
    return {
        "A1": jnp.asarray(A1, bf16),
        "b1": jnp.asarray(b1),
        "A2": jnp.asarray(A2, bf16),
        "b2": jnp.asarray(b2),
        "Wf1": jnp.asarray(Wf1, bf16),
        "bf1": jnp.asarray(np.asarray(p["b_fc1"], f32).reshape(1, 128)),
        "Wf2": jnp.asarray(np.asarray(p["w_fc2"], f32).reshape(1, 128)),
        "bf2": jnp.asarray(np.asarray(p["b_fc2"], f32).reshape(1, 1)),
    }


# ---------------------------------------------------------------------------
# Deterministic parameter init (PyTorch layouts / default-init style)
# ---------------------------------------------------------------------------

def init_params(key):
    ks = jax.random.split(key, 8)

    def u(k, shape, fan_in):
        bound = 1.0 / jnp.sqrt(fan_in)
        return jax.random.uniform(k, shape, jnp.float32, -bound, bound)

    return {
        "w_conv1": u(ks[0], (16, 1, 3, 3), 1 * 9),
        "b_conv1": u(ks[1], (16,), 1 * 9),
        "w_conv2": u(ks[2], (32, 16, 3, 3), 16 * 9),
        "b_conv2": u(ks[3], (32,), 16 * 9),
        "w_fc1":   u(ks[4], (128, 512), 512),     # torch layout (out, in)
        "b_fc1":   u(ks[5], (128,), 512),
        "w_fc2":   u(ks[6], (1, 128), 128),
        "b_fc2":   u(ks[7], (1,), 128),
    }


# ---------------------------------------------------------------------------
# Pure-JAX reference (PyTorch semantics) for verification
# ---------------------------------------------------------------------------

def reference_forward(x_nchw, p):
    dn = ("NCHW", "OIHW", "NCHW")

    def conv(x, w, b):
        y = jax.lax.conv_general_dilated(x, w, (1, 1), ((1, 1), (1, 1)),
                                         dimension_numbers=dn)
        return y + b.reshape(1, -1, 1, 1)

    def pool(x):
        return jax.lax.reduce_window(x, -jnp.inf, jax.lax.max,
                                     (1, 1, 2, 2), (1, 1, 2, 2), "VALID")

    x = pool(jnp.maximum(conv(x_nchw, p["w_conv1"], p["b_conv1"]), 0.0))
    x = pool(jnp.maximum(conv(x, p["w_conv2"], p["b_conv2"]), 0.0))
    x = x.reshape(x.shape[0], -1)
    x = jnp.maximum(x @ p["w_fc1"].T + p["b_fc1"], 0.0)
    return x @ p["w_fc2"].T + p["b_fc2"]


# ---------------------------------------------------------------------------

if __name__ == "__main__":
    key = jax.random.PRNGKey(0)
    k_x, k_p = jax.random.split(key)

    x = jax.random.normal(k_x, (2, 1, 16, 16), jnp.float32)   # NCHW, like PyTorch
    params = init_params(k_p)
    prep = prepare_params(params)                             # one-time weight prep

    fwd = jax.jit(cnn2d_forward)
    out = jax.block_until_ready(fwd(x, prep))
    ref = jax.block_until_ready(reference_forward(x, params))

    assert out.shape == (2, 1), out.shape
    # bf16 MXU operands (f32 accumulation) -> tolerance loosened vs. the f32 version.
    assert jnp.allclose(out, ref, atol=3e-2, rtol=3e-2), (out, ref)

    print("KERNEL_OK")
</pallas_src>

<mosaic_0001>
module attributes {stable_mosaic.version = 11 : i64} {
  func.func @_fused_cnn_kernel(%arg0: i32, %arg1: memref<256x54xbf16, #tpu.memory_space<vmem>>, %arg2: memref<54x256xbf16, #tpu.memory_space<vmem>>, %arg3: memref<1x128xf32, #tpu.memory_space<vmem>>, %arg4: memref<3x128x256xbf16, #tpu.memory_space<vmem>>, %arg5: memref<1x128xf32, #tpu.memory_space<vmem>>, %arg6: memref<4x128x128xbf16, #tpu.memory_space<vmem>>, %arg7: memref<1x128xf32, #tpu.memory_space<vmem>>, %arg8: memref<1x128xf32, #tpu.memory_space<vmem>>, %arg9: memref<1x1xf32, #tpu.memory_space<vmem>>, %arg10: memref<16x1xf32, #tpu.memory_space<vmem>>) attributes {dimension_semantics = [#tpu.dimension_semantics<parallel>], iteration_bounds = array<i64: 1>, scalar_prefetch = 0 : i64, scratch_operands = 0 : i64, tpu.core_type = #tpu.core_type<tc>, window_params = [{transform_indices = @transform_0, window_bounds = array<i64: 256, 54>}, {pipeline_mode = #tpu.pipeline_mode<synchronous>, transform_indices = @transform_1, window_bounds = array<i64: 54, 256>}, {pipeline_mode = #tpu.pipeline_mode<synchronous>, transform_indices = @transform_2, window_bounds = array<i64: 1, 128>}, {pipeline_mode = #tpu.pipeline_mode<synchronous>, transform_indices = @transform_3, window_bounds = array<i64: 3, 128, 256>}, {pipeline_mode = #tpu.pipeline_mode<synchronous>, transform_indices = @transform_4, window_bounds = array<i64: 1, 128>}, {pipeline_mode = #tpu.pipeline_mode<synchronous>, transform_indices = @transform_5, window_bounds = array<i64: 4, 128, 128>}, {pipeline_mode = #tpu.pipeline_mode<synchronous>, transform_indices = @transform_6, window_bounds = array<i64: 1, 128>}, {pipeline_mode = #tpu.pipeline_mode<synchronous>, transform_indices = @transform_7, window_bounds = array<i64: 1, 128>}, {pipeline_mode = #tpu.pipeline_mode<synchronous>, transform_indices = @transform_8, window_bounds = array<i64: 1, 1>}, {transform_indices = @transform_9, window_bounds = array<i64: 16, 1>}]} {
    %c0 = arith.constant 0 : index
    %c0_0 = arith.constant 0 : index
    %0 = vector.load %arg1[%c0, %c0_0] : memref<256x54xbf16, #tpu.memory_space<vmem>>, vector<256x54xbf16>
    %c0_1 = arith.constant 0 : index
    %c0_2 = arith.constant 0 : index
    %1 = vector.load %arg2[%c0_1, %c0_2] : memref<54x256xbf16, #tpu.memory_space<vmem>>, vector<54x256xbf16>
    %cst = arith.constant dense<0.000000e+00> : vector<256x256xf32>
    %2 = tpu.matmul %0, %1, %cst {dimension_numbers = #tpu.dot_dimension_numbers<[1], [0], [0], [1], [0, 0, 1, 1], [], []>} : vector<256x54xbf16>, vector<54x256xbf16>, vector<256x256xf32> -> vector<256x256xf32>
    %3 = vector.extract_strided_slice %2 {offsets = [0, 0], sizes = [128, 256], strides = [1, 1]} : vector<256x256xf32> to vector<128x256xf32>
    %4 = vector.extract_strided_slice %2 {offsets = [128, 0], sizes = [128, 256], strides = [1, 1]} : vector<256x256xf32> to vector<128x256xf32>
    %5 = arith.maximumf %3, %4 : vector<128x256xf32>
    %6 = vector.extract_strided_slice %5 {offsets = [0, 0], sizes = [128, 128], strides = [1, 1]} : vector<128x256xf32> to vector<128x128xf32>
    %7 = vector.extract_strided_slice %5 {offsets = [0, 128], sizes = [128, 128], strides = [1, 1]} : vector<128x256xf32> to vector<128x128xf32>
    %8 = arith.maximumf %6, %7 : vector<128x128xf32>
    %c0_3 = arith.constant 0 : index
    %c0_4 = arith.constant 0 : index
    %9 = vector.load %arg3[%c0_3, %c0_4] : memref<1x128xf32, #tpu.memory_space<vmem>>, vector<1x128xf32>
    %10 = vector.broadcast %9 : vector<1x128xf32> to vector<128x128xf32>
    %11 = arith.addf %8, %10 : vector<128x128xf32>
    %cst_5 = arith.constant 0.000000e+00 : f32
    %12 = vector.broadcast %cst_5 : f32 to vector<128x128xf32>
    %13 = arith.maximumf %11, %12 : vector<128x128xf32>
    %14 = arith.truncf %13 : vector<128x128xf32> to vector<128x128xbf16>
    %cst_6 = arith.constant 0.000000e+00 : bf16
    %15 = vector.broadcast %cst_6 : bf16 to vector<16x128xbf16>
    %16 = tpu.concatenate %15, %14, %15 in 0 : vector<16x128xbf16>, vector<128x128xbf16>, vector<16x128xbf16> -> vector<160x128xbf16>
    %17 = vector.extract_strided_slice %16 {offsets = [0, 0], sizes = [128, 128], strides = [1, 1]} : vector<160x128xbf16> to vector<128x128xbf16>
    %c0_7 = arith.constant 0 : index
    %c0_8 = arith.constant 0 : index
    %c0_9 = arith.constant 0 : index
    %18 = vector.load %arg4[%c0_7, %c0_8, %c0_9] : memref<3x128x256xbf16, #tpu.memory_space<vmem>>, vector<1x128x256xbf16>
    %19 = vector.shape_cast %18 : vector<1x128x256xbf16> to vector<128x256xbf16>
    %cst_10 = arith.constant dense<0.000000e+00> : vector<128x256xf32>
    %20 = tpu.matmul %17, %19, %cst_10 {dimension_numbers = #tpu.dot_dimension_numbers<[1], [0], [0], [1], [0, 0, 1, 1], [], []>} : vector<128x128xbf16>, vector<128x256xbf16>, vector<128x256xf32> -> vector<128x256xf32>
    %21 = vector.extract_strided_slice %16 {offsets = [16, 0], sizes = [128, 128], strides = [1, 1]} : vector<160x128xbf16> to vector<128x128xbf16>
    %c1 = arith.constant 1 : index
    %c0_11 = arith.constant 0 : index
    %c0_12 = arith.constant 0 : index
    %22 = vector.load %arg4[%c1, %c0_11, %c0_12] : memref<3x128x256xbf16, #tpu.memory_space<vmem>>, vector<1x128x256xbf16>
    %23 = vector.shape_cast %22 : vector<1x128x256xbf16> to vector<128x256xbf16>
    %cst_13 = arith.constant dense<0.000000e+00> : vector<128x256xf32>
    %24 = tpu.matmul %21, %23, %cst_13 {dimension_numbers = #tpu.dot_dimension_numbers<[1], [0], [0], [1], [0, 0, 1, 1], [], []>} : vector<128x128xbf16>, vector<128x256xbf16>, vector<128x256xf32> -> vector<128x256xf32>
    %25 = arith.addf %20, %24 : vector<128x256xf32>
    %26 = vector.extract_strided_slice %16 {offsets = [32, 0], sizes = [128, 128], strides = [1, 1]} : vector<160x128xbf16> to vector<128x128xbf16>
    %c2 = arith.constant 2 : index
    %c0_14 = arith.constant 0 : index
    %c0_15 = arith.constant 0 : index
    %27 = vector.load %arg4[%c2, %c0_14, %c0_15] : memref<3x128x256xbf16, #tpu.memory_space<vmem>>, vector<1x128x256xbf16>
    %28 = vector.shape_cast %27 : vector<1x128x256xbf16> to vector<128x256xbf16>
    %cst_16 = arith.constant dense<0.000000e+00> : vector<128x256xf32>
    %29 = tpu.matmul %26, %28, %cst_16 {dimension_numbers = #tpu.dot_dimension_numbers<[1], [0], [0], [1], [0, 0, 1, 1], [], []>} : vector<128x128xbf16>, vector<128x256xbf16>, vector<128x256xf32> -> vector<128x256xf32>
    %30 = arith.addf %25, %29 : vector<128x256xf32>
    %cst_17 = arith.constant 0.000000e+00 : f32
    %31 = vector.broadcast %cst_17 : f32 to vector<16x128xf32>
    %32 = vector.extract_strided_slice %30 {offsets = [0, 0], sizes = [16, 256], strides = [1, 1]} : vector<128x256xf32> to vector<16x256xf32>
    %33 = vector.extract_strided_slice %30 {offsets = [16, 0], sizes = [16, 256], strides = [1, 1]} : vector<128x256xf32> to vector<16x256xf32>
    %34 = arith.maximumf %32, %33 : vector<16x256xf32>
    %35 = vector.extract_strided_slice %34 {offsets = [0, 0], sizes = [16, 128], strides = [1, 1]} : vector<16x256xf32> to vector<16x128xf32>
    %36 = vector.extract_strided_slice %34 {offsets = [0, 128], sizes = [16, 128], strides = [1, 1]} : vector<16x256xf32> to vector<16x128xf32>
    %37 = arith.maximumf %35, %36 : vector<16x128xf32>
    %c0_18 = arith.constant 0 : index
    %c0_19 = arith.constant 0 : index
    %38 = vector.load %arg5[%c0_18, %c0_19] : memref<1x128xf32, #tpu.memory_space<vmem>>, vector<1x128xf32>
    %39 = vector.broadcast %38 : vector<1x128xf32> to vector<16x128xf32>
    %40 = arith.addf %37, %39 : vector<16x128xf32>
    %cst_20 = arith.constant 0.000000e+00 : f32
    %41 = vector.broadcast %cst_20 : f32 to vector<16x128xf32>
    %42 = arith.maximumf %40, %41 : vector<16x128xf32>
    %43 = arith.truncf %42 : vector<16x128xf32> to vector<16x128xbf16>
    %c0_21 = arith.constant 0 : index
    %c0_22 = arith.constant 0 : index
    %c0_23 = arith.constant 0 : index
    %44 = vector.load %arg6[%c0_21, %c0_22, %c0_23] : memref<4x128x128xbf16, #tpu.memory_space<vmem>>, vector<1x128x128xbf16>
    %45 = vector.shape_cast %44 : vector<1x128x128xbf16> to vector<128x128xbf16>
    %cst_24 = arith.constant dense<0.000000e+00> : vector<16x128xf32>
    %46 = tpu.matmul %43, %45, %cst_24 {dimension_numbers = #tpu.dot_dimension_numbers<[1], [0], [0], [1], [0, 0, 1, 1], [], []>} : vector<16x128xbf16>, vector<128x128xbf16>, vector<16x128xf32> -> vector<16x128xf32>
    %47 = arith.addf %31, %46 : vector<16x128xf32>
    %48 = vector.extract_strided_slice %30 {offsets = [32, 0], sizes = [16, 256], strides = [1, 1]} : vector<128x256xf32> to vector<16x256xf32>
    %49 = vector.extract_strided_slice %30 {offsets = [48, 0], sizes = [16, 256], strides = [1, 1]} : vector<128x256xf32> to vector<16x256xf32>
    %50 = arith.maximumf %48, %49 : vector<16x256xf32>
    %51 = vector.extract_strided_slice %50 {offsets = [0, 0], sizes = [16, 128], strides = [1, 1]} : vector<16x256xf32> to vector<16x128xf32>
    %52 = vector.extract_strided_slice %50 {offsets = [0, 128], sizes = [16, 128], strides = [1, 1]} : vector<16x256xf32> to vector<16x128xf32>
    %53 = arith.maximumf %51, %52 : vector<16x128xf32>
    %c0_25 = arith.constant 0 : index
    %c0_26 = arith.constant 0 : index
    %54 = vector.load %arg5[%c0_25, %c0_26] : memref<1x128xf32, #tpu.memory_space<vmem>>, vector<1x128xf32>
    %55 = vector.broadcast %54 : vector<1x128xf32> to vector<16x128xf32>
    %56 = arith.addf %53, %55 : vector<16x128xf32>
    %cst_27 = arith.constant 0.000000e+00 : f32
    %57 = vector.broadcast %cst_27 : f32 to vector<16x128xf32>
    %58 = arith.maximumf %56, %57 : vector<16x128xf32>
    %59 = arith.truncf %58 : vector<16x128xf32> to vector<16x128xbf16>
    %c1_28 = arith.constant 1 : index
    %c0_29 = arith.constant 0 : index
    %c0_30 = arith.constant 0 : index
    %60 = vector.load %arg6[%c1_28, %c0_29, %c0_30] : memref<4x128x128xbf16, #tpu.memory_space<vmem>>, vector<1x128x128xbf16>
    %61 = vector.shape_cast %60 : vector<1x128x128xbf16> to vector<128x128xbf16>
    %cst_31 = arith.constant dense<0.000000e+00> : vector<16x128xf32>
    %62 = tpu.matmul %59, %61, %cst_31 {dimension_numbers = #tpu.dot_dimension_numbers<[1], [0], [0], [1], [0, 0, 1, 1], [], []>} : vector<16x128xbf16>, vector<128x128xbf16>, vector<16x128xf32> -> vector<16x128xf32>
    %63 = arith.addf %47, %62 : vector<16x128xf32>
    %64 = vector.extract_strided_slice %30 {offsets = [64, 0], sizes = [16, 256], strides = [1, 1]} : vector<128x256xf32> to vector<16x256xf32>
    %65 = vector.extract_strided_slice %30 {offsets = [80, 0], sizes = [16, 256], strides = [1, 1]} : vector<128x256xf32> to vector<16x256xf32>
    %66 = arith.maximumf %64, %65 : vector<16x256xf32>
    %67 = vector.extract_strided_slice %66 {offsets = [0, 0], sizes = [16, 128], strides = [1, 1]} : vector<16x256xf32> to vector<16x128xf32>
    %68 = vector.extract_strided_slice %66 {offsets = [0, 128], sizes = [16, 128], strides = [1, 1]} : vector<16x256xf32> to vector<16x128xf32>
    %69 = arith.maximumf %67, %68 : vector<16x128xf32>
    %c0_32 = arith.constant 0 : index
    %c0_33 = arith.constant 0 : index
    %70 = vector.load %arg5[%c0_32, %c0_33] : memref<1x128xf32, #tpu.memory_space<vmem>>, vector<1x128xf32>
    %71 = vector.broadcast %70 : vector<1x128xf32> to vector<16x128xf32>
    %72 = arith.addf %69, %71 : vector<16x128xf32>
    %cst_34 = arith.constant 0.000000e+00 : f32
    %73 = vector.broadcast %cst_34 : f32 to vector<16x128xf32>
    %74 = arith.maximumf %72, %73 : vector<16x128xf32>
    %75 = arith.truncf %74 : vector<16x128xf32> to vector<16x128xbf16>
    %c2_35 = arith.constant 2 : index
    %c0_36 = arith.constant 0 : index
    %c0_37 = arith.constant 0 : index
    %76 = vector.load %arg6[%c2_35, %c0_36, %c0_37] : memref<4x128x128xbf16, #tpu.memory_space<vmem>>, vector<1x128x128xbf16>
    %77 = vector.shape_cast %76 : vector<1x128x128xbf16> to vector<128x128xbf16>
    %cst_38 = arith.constant dense<0.000000e+00> : vector<16x128xf32>
    %78 = tpu.matmul %75, %77, %cst_38 {dimension_numbers = #tpu.dot_dimension_numbers<[1], [0], [0], [1], [0, 0, 1, 1], [], []>} : vector<16x128xbf16>, vector<128x128xbf16>, vector<16x128xf32> -> vector<16x128xf32>
    %79 = arith.addf %63, %78 : vector<16x128xf32>
    %80 = vector.extract_strided_slice %30 {offsets = [96, 0], sizes = [16, 256], strides = [1, 1]} : vector<128x256xf32> to vector<16x256xf32>
    %81 = vector.extract_strided_slice %30 {offsets = [112, 0], sizes = [16, 256], strides = [1, 1]} : vector<128x256xf32> to vector<16x256xf32>
    %82 = arith.maximumf %80, %81 : vector<16x256xf32>
    %83 = vector.extract_strided_slice %82 {offsets = [0, 0], sizes = [16, 128], strides = [1, 1]} : vector<16x256xf32> to vector<16x128xf32>
    %84 = vector.extract_strided_slice %82 {offsets = [0, 128], sizes = [16, 128], strides = [1, 1]} : vector<16x256xf32> to vector<16x128xf32>
    %85 = arith.maximumf %83, %84 : vector<16x128xf32>
    %c0_39 = arith.constant 0 : index
    %c0_40 = arith.constant 0 : index
    %86 = vector.load %arg5[%c0_39, %c0_40] : memref<1x128xf32, #tpu.memory_space<vmem>>, vector<1x128xf32>
    %87 = vector.broadcast %86 : vector<1x128xf32> to vector<16x128xf32>
    %88 = arith.addf %85, %87 : vector<16x128xf32>
    %cst_41 = arith.constant 0.000000e+00 : f32
    %89 = vector.broadcast %cst_41 : f32 to vector<16x128xf32>
    %90 = arith.maximumf %88, %89 : vector<16x128xf32>
    %91 = arith.truncf %90 : vector<16x128xf32> to vector<16x128xbf16>
    %c3 = arith.constant 3 : index
    %c0_42 = arith.constant 0 : index
    %c0_43 = arith.constant 0 : index
    %92 = vector.load %arg6[%c3, %c0_42, %c0_43] : memref<4x128x128xbf16, #tpu.memory_space<vmem>>, vector<1x128x128xbf16>
    %93 = vector.shape_cast %92 : vector<1x128x128xbf16> to vector<128x128xbf16>
    %cst_44 = arith.constant dense<0.000000e+00> : vector<16x128xf32>
    %94 = tpu.matmul %91, %93, %cst_44 {dimension_numbers = #tpu.dot_dimension_numbers<[1], [0], [0], [1], [0, 0, 1, 1], [], []>} : vector<16x128xbf16>, vector<128x128xbf16>, vector<16x128xf32> -> vector<16x128xf32>
    %95 = arith.addf %79, %94 : vector<16x128xf32>
    %c0_45 = arith.constant 0 : index
    %c0_46 = arith.constant 0 : index
    %96 = vector.load %arg7[%c0_45, %c0_46] : memref<1x128xf32, #tpu.memory_space<vmem>>, vector<1x128xf32>
    %97 = vector.broadcast %96 : vector<1x128xf32> to vector<16x128xf32>
    %98 = arith.addf %95, %97 : vector<16x128xf32>
    %cst_47 = arith.constant 0.000000e+00 : f32
    %99 = vector.broadcast %cst_47 : f32 to vector<16x128xf32>
    %100 = arith.maximumf %98, %99 : vector<16x128xf32>
    %c0_48 = arith.constant 0 : index
    %c0_49 = arith.constant 0 : index
    %101 = vector.load %arg8[%c0_48, %c0_49] : memref<1x128xf32, #tpu.memory_space<vmem>>, vector<1x128xf32>
    %102 = vector.broadcast %101 : vector<1x128xf32> to vector<16x128xf32>
    %103 = arith.mulf %100, %102 : vector<16x128xf32>
    %cst_50 = arith.constant dense<0.000000e+00> : vector<16xf32>
    %104 = vector.multi_reduction <add>, %103, %cst_50 [1] : vector<16x128xf32> to vector<16xf32>
    %105 = vector.shape_cast %104 : vector<16xf32> to vector<16x1xf32>
    %c0_51 = arith.constant 0 : index
    %c0_52 = arith.constant 0 : index
    %106 = vector.load %arg9[%c0_51, %c0_52] : memref<1x1xf32, #tpu.memory_space<vmem>>, vector<1x1xf32>
    %107 = vector.broadcast %106 : vector<1x1xf32> to vector<16x1xf32>
    %108 = arith.addf %105, %107 : vector<16x1xf32>
    %c0_53 = arith.constant 0 : index
    %c0_54 = arith.constant 0 : index
    %109 = vector.load %arg10[%c0_53, %c0_54] : memref<16x1xf32, #tpu.memory_space<vmem>>, vector<16x1xf32>
    tpu.vector_store %arg10[%c0_53, %c0_54], %108 {strides = array<i32>} : memref<16x1xf32, #tpu.memory_space<vmem>>, vector<16x1xf32>,
    return
  }
  func.func @transform_0(%arg0: i32) -> (i32, i32) {
    %c0_i32 = arith.constant 0 : i32
    %c0_i32_0 = arith.constant 0 : i32
    return %arg0, %c0_i32 : i32, i32
  }
  func.func @transform_1(%arg0: i32) -> (i32, i32) {
    %c0_i32 = arith.constant 0 : i32
    %c0_i32_0 = arith.constant 0 : i32
    %c0_i32_1 = arith.constant 0 : i32
    return %c0_i32, %c0_i32_0 : i32, i32
  }
  func.func @transform_2(%arg0: i32) -> (i32, i32) {
    %c0_i32 = arith.constant 0 : i32
    %c0_i32_0 = arith.constant 0 : i32
    %c0_i32_1 = arith.constant 0 : i32
    return %c0_i32, %c0_i32_0 : i32, i32
  }
  func.func @transform_3(%arg0: i32) -> (i32, i32, i32) {
    %c0_i32 = arith.constant 0 : i32
    %c0_i32_0 = arith.constant 0 : i32
    %c0_i32_1 = arith.constant 0 : i32
    %c0_i32_2 = arith.constant 0 : i32
    return %c0_i32, %c0_i32_0, %c0_i32_1 : i32, i32, i32
  }
  func.func @transform_4(%arg0: i32) -> (i32, i32) {
    %c0_i32 = arith.constant 0 : i32
    %c0_i32_0 = arith.constant 0 : i32
    %c0_i32_1 = arith.constant 0 : i32
    return %c0_i32, %c0_i32_0 : i32, i32
  }
  func.func @transform_5(%arg0: i32) -> (i32, i32, i32) {
    %c0_i32 = arith.constant 0 : i32
    %c0_i32_0 = arith.constant 0 : i32
    %c0_i32_1 = arith.constant 0 : i32
    %c0_i32_2 = arith.constant 0 : i32
    return %c0_i32, %c0_i32_0, %c0_i32_1 : i32, i32, i32
  }
  func.func @transform_6(%arg0: i32) -> (i32, i32) {
    %c0_i32 = arith.constant 0 : i32
    %c0_i32_0 = arith.constant 0 : i32
    %c0_i32_1 = arith.constant 0 : i32
    return %c0_i32, %c0_i32_0 : i32, i32
  }
  func.func @transform_7(%arg0: i32) -> (i32, i32) {
    %c0_i32 = arith.constant 0 : i32
    %c0_i32_0 = arith.constant 0 : i32
    %c0_i32_1 = arith.constant 0 : i32
    return %c0_i32, %c0_i32_0 : i32, i32
  }
  func.func @transform_8(%arg0: i32) -> (i32, i32) {
    %c0_i32 = arith.constant 0 : i32
    %c0_i32_0 = arith.constant 0 : i32
    %c0_i32_1 = arith.constant 0 : i32
    return %c0_i32, %c0_i32_0 : i32, i32
  }
  func.func @transform_9(%arg0: i32) -> (i32, i32) {
    %c0_i32 = arith.constant 0 : i32
    %c0_i32_0 = arith.constant 0 : i32
    return %arg0, %c0_i32 : i32, i32
  }
}

</mosaic_0001>

<bundles_post_ra>
// kernel: cnn2d_forward.1
= control target key start
LH: loop header
LB: loop body
LE: loop exit
PB: predicated region body
PF: predicated region fallthrough
CT: control target
= control target key end

     0   :  { %vm238_vm0 = vcmask 1042432   ;;  %vm189_vm1 = vcmask 441344   ;;  %vm1578_vm2 = vcmask 7168   ;;  %s3082_s1 = inlined_call_operand.vmem [shape: bf16[54,256], index: 1, kind: input, shape index: {}]   ;;  %s3083_s0 = inlined_call_operand.vmem [shape: bf16[256,54], index: 0, kind: input, shape index: {}]   ;;  %s3084_s2 = inlined_call_operand.vmem [shape: f32[1,128], index: 2, kind: input, shape index: {}]   ;;  %s3085_s3 = inlined_call_operand.vmem [shape: bf16[3,128,256], index: 3, kind: input, shape index: {}]   ;;  %s3086_s4 = inlined_call_operand.vmem [shape: f32[1,128], index: 4, kind: input, shape index: {}]   ;;  %s3087_s5 = inlined_call_operand.vmem [shape: bf16[4,128,128], index: 5, kind: input, shape index: {}]   ;;  %s3088_s6 = inlined_call_operand.vmem [shape: f32[1,128], index: 6, kind: input, shape index: {}]   ;;  %s3089_s7 = inlined_call_operand.vmem [shape: f32[1,128], index: 7, kind: input, shape index: {}]   ;;  %s3090_s8 = inlined_call_operand.<no memory space> [shape: f32[1,1], index: 8, kind: input, shape index: {}]   ;;  %s3091_s9 = inlined_call_operand.vmem [shape: f32[16,1], index: 9, kind: output, shape index: {}]  }
   0x1   :  { %v73_v0 = vld [vmem:[%s3082_s1 + $0x30] sm:$0x77]  ;;  %v1667_v3 = vld [vmem:[%s3082_s1 + $0x20] sm:$0xf]  ;;  %v2126_v6 = vld [vmem:[%s3082_s1 + $0x24] sm:$0xf0] }
   0x2   :  { %v173_v1 = vunpack.c.l.b16 %v73_v0  ;;  %v174_v2 = vunpack.c.h.b16 %v73_v0  ;;  %v2125_v7 = vld [vmem:[%s3082_s1 + $0x24] sm:$0xf]  ;;  %v1669_v8 = vld [vmem:[%s3082_s1 + $0x28] sm:$0xf0]  ;;  %v1668_v11 = vor.u32 %v2126_v6, %v1667_v3  ;;  %v1659_v13 = vld [vmem:[%s3082_s1 + $0x10] sm:$0xf] }
   0x3   :  { %v1672_v12 = vor.u32 %v2125_v7, %v1669_v8  ;;  %v2124_v14 = vld [vmem:[%s3082_s1 + $0x14] sm:$0xf0]  ;;  %v2123_v15 = vld [vmem:[%s3082_s1 + $0x14] sm:$0xf]  ;;  %v1661_v16 = vld [vmem:[%s3082_s1 + $0x18] sm:$0xf0] }
   0x4   :  { %v181_v4 = vpack.c.b16 %v173_v1, %v173_v1  ;;  %v182_v5 = vpack.c.b16 %v174_v2, %v174_v2  ;;  %v1660_v17 = vor.u32 %v2124_v14, %v1659_v13  ;;  %v1664_v18 = vor.u32 %v2123_v15, %v1661_v16  ;;  %v1651_v19 = vld [vmem:[%s3082_s1] sm:$0xf]  ;;  %v2122_v20 = vld [vmem:[%s3082_s1 + $0x4] sm:$0xf0]  ;;  %v2121_v21 = vld [vmem:[%s3082_s1 + $0x4] sm:$0xf] }
   0x5   :  { %v1653_v22 = vld [vmem:[%s3082_s1 + $0x8] sm:$0xf0]  ;;  %v1652_v23 = vor.u32 %v2122_v20, %v1651_v19  ;;  %v2105_v25 = vld [vmem:[%s3083_s0] sm:$0xff]  ;;  %v2107_v27 = vld [vmem:[%s3083_s0 + $0x10] sm:$0xff] }
   0x6   :  { %v240_v9 = vsel %vm238_vm0, %v181_v4, 0  ;;  %v243_v10 = vsel %vm238_vm0, %v182_v5, 0  ;;  %v1656_v24 = vor.u32 %v2121_v21, %v1653_v22  ;;  %v2106_v26 = vld [vmem:[%s3083_s0 + $0x8] sm:$0xff]  ;;  %v2108_v28 = vld [vmem:[%s3083_s0 + $0x18] sm:$0xff]  ;;  %v2119_v29 = vld [vmem:[%s3083_s0 + $0x70] sm:$0xff] }
   0x7   :  { %249 = vmatpush.bf16.msra.mxu0 %v240_v9  ;;  %338 = vmatpush.bf16.msra.mxu1 %v243_v10  ;;  %v2109_v30 = vld [vmem:[%s3083_s0 + $0x20] sm:$0xff]  ;;  %v2120_v31 = vld [vmem:[%s3083_s0 + $0x78] sm:$0xff]  ;;  %v2110_v32 = vld [vmem:[%s3083_s0 + $0x28] sm:$0xff] }
   0x8   :  { %2207 = vmatpush.bf16.msra.mxu2 %v240_v9  ;;  %2211 = vmatpush.bf16.msra.mxu3 %v243_v10  ;;  %v2111_v33 = vld [vmem:[%s3083_s0 + $0x30] sm:$0xff]  ;;  %v2112_v34 = vld [vmem:[%s3083_s0 + $0x38] sm:$0xff]  ;;  %v2113_v35 = vld [vmem:[%s3083_s0 + $0x40] sm:$0xff] }
   0x9   :  { %v2114_v40 = vld [vmem:[%s3083_s0 + $0x48] sm:$0xff]  ;;  %v1923_v45 = vld [vmem:[%s3085_s3 + $0x170] sm:$0xf]  ;;  %v2174_v46 = vld [vmem:[%s3085_s3 + $0x174] sm:$0xf0] }
   0xa   :  { %v2173_v47 = vld [vmem:[%s3085_s3 + $0x174] sm:$0xf]  ;;  %v1924_v48 = vor.u32 %v2174_v46, %v1923_v45  ;;  %v1925_v49 = vld [vmem:[%s3085_s3 + $0x178] sm:$0xf0]  ;;  %v1915_v61 = vld [vmem:[%s3085_s3 + $0x160] sm:$0xf] }
   0xb   :  { %250 = vmatpush.bf16.msra.mxu0 %v1668_v11  ;;  %339 = vmatpush.bf16.msra.mxu1 %v1672_v12  ;;  %v1928_v50 = vor.u32 %v2173_v47, %v1925_v49  ;;  %v2115_v51 = vld [vmem:[%s3083_s0 + $0x50] sm:$0xff]  ;;  %v2116_v56 = vld [vmem:[%s3083_s0 + $0x58] sm:$0xff]  ;;  %v2172_v62 = vld [vmem:[%s3085_s3 + $0x164] sm:$0xf0] }
   0xc   :  { %2208 = vmatpush.bf16.msra.mxu2 %v1668_v11  ;;  %2212 = vmatpush.bf16.msra.mxu3 %v1672_v12  ;;  %v2171_v63 = vld [vmem:[%s3085_s3 + $0x164] sm:$0xf]  ;;  %v1916_v0 = vor.u32 %v2172_v62, %v1915_v61  ;;  %v1917_v1 = vld [vmem:[%s3085_s3 + $0x168] sm:$0xf0]  ;;  %v1779_v11 = vld [vmem:[%s3085_s3 + $0xf0] sm:$0xf] }
   0xd   :  { %v1920_v2 = vor.u32 %v2171_v63, %v1917_v1  ;;  %v2117_v3 = vld [vmem:[%s3083_s0 + $0x60] sm:$0xff]  ;;  %v2118_v8 = vld [vmem:[%s3083_s0 + $0x68] sm:$0xff]  ;;  %v2158_v12 = vld [vmem:[%s3085_s3 + $0xf4] sm:$0xf0] }
   0xe   :  { %v2157_v13 = vld [vmem:[%s3085_s3 + $0xf4] sm:$0xf]  ;;  %v1780_v14 = vor.u32 %v2158_v12, %v1779_v11  ;;  %v1781_v15 = vld [vmem:[%s3085_s3 + $0xf8] sm:$0xf0]  ;;  %v1771_v19 = vld [vmem:[%s3085_s3 + $0xe0] sm:$0xf] }
   0xf   :  { %251 = vmatpush.bf16.msra.mxu0 %v1660_v17  ;;  %340 = vmatpush.bf16.msra.mxu1 %v1664_v18  ;;  %v1784_v16 = vor.u32 %v2157_v13, %v1781_v15  ;;  %v2156_v20 = vld [vmem:[%s3085_s3 + $0xe4] sm:$0xf0]  ;;  %v2155_v21 = vld [vmem:[%s3085_s3 + $0xe4] sm:$0xf]  ;;  %v1765_v45 = vld [vmem:[%s3085_s3 + $0xd8] sm:$0xf0] }
  0x10   :  { %2209 = vmatpush.bf16.msra.mxu2 %v1660_v17  ;;  %2213 = vmatpush.bf16.msra.mxu3 %v1664_v18  ;;  %v2151_v61 = vld [vmem:[%s3085_s3 + $0xc4] sm:$0xf]  ;;  %v1757_v63 = vld [vmem:[%s3085_s3 + $0xc8] sm:$0xf0]  ;;  %v2150_v11 = vld [vmem:[%s3085_s3 + $0xb4] sm:$0xf0] }
  0x11   :  { %v1760_v1 = vor.u32 %v2151_v61, %v1757_v63  ;;  %v2149_v12 = vld [vmem:[%s3085_s3 + $0xb4] sm:$0xf] }
  0x13   :  { %252 = vmatpush.bf16.msra.mxu0 %v1652_v23  ;;  %341 = vmatpush.bf16.msra.mxu1 %v1656_v24 }
  0x14   :  { %2210 = vmatpush.bf16.msra.mxu2 %v1652_v23  ;;  %2214 = vmatpush.bf16.msra.mxu3 %v1656_v24  ;;  %v1772_v24 = vor.u32 %v2156_v20, %v1771_v19  ;;  %v1739_v20 = vld [vmem:[%s3085_s3 + $0xa0] sm:$0xf] }
  0x16   :  { %1673 = vmatmul.msk.bf16.vlgmr.msra.gmra.mxu0 %vm189_vm1, %v2105_v25  ;;  %1689 = vmatmul.msk.bf16.vlgmr.msra.gmra.mxu1 %vm189_vm1, %v2105_v25  ;;  %v1773_v25 = vld [vmem:[%s3085_s3 + $0xe8] sm:$0xf0] }
  0x17   :  { %1687 = vmatmul.msk.bf16.vlgmr.msra.gmra.mxu2 %vm189_vm1, %v2119_v29  ;;  %1703 = vmatmul.msk.bf16.vlgmr.msra.gmra.mxu3 %vm189_vm1, %v2119_v29  ;;  %v1776_v29 = vor.u32 %v2155_v21, %v1773_v25  ;;  %v2148_v21 = vld [vmem:[%s3085_s3 + $0xa4] sm:$0xf0] }
  0x18   :  { %1057 = vmatpush.bf16.msrb.mxu0 %v1924_v48  ;;  %1106 = vmatpush.bf16.msrb.mxu1 %v1928_v50 }
  0x19   :  { %684 = vmatpush.bf16.msrb.mxu2 %v1780_v14  ;;  %733 = vmatpush.bf16.msrb.mxu3 %v1784_v16  ;;  %v1749_v14 = vld [vmem:[%s3085_s3 + $0xb8] sm:$0xf0] }
  0x1a   :  { %v1752_v15 = vor.u32 %v2149_v12, %v1749_v14  ;;  %v1891_v12 = vld [vmem:[%s3085_s3 + $0x130] sm:$0xf]  ;;  %v2165_v14 = vld [vmem:[%s3085_s3 + $0x134] sm:$0xf] }
  0x1c   :  { %1058 = vmatpush.bf16.msrb.mxu0 %v1916_v0  ;;  %1107 = vmatpush.bf16.msrb.mxu1 %v1920_v2 }
  0x1d   :  { %685 = vmatpush.bf16.msrb.mxu2 %v1772_v24  ;;  %734 = vmatpush.bf16.msrb.mxu3 %v1776_v29  ;;  %v1741_v24 = vld [vmem:[%s3085_s3 + $0xa8] sm:$0xf0] }
  0x26   :  { %1674 = vmatmul.msk.bf16.gmra.mxu0 %vm189_vm1, %v2106_v26  ;;  %1690 = vmatmul.msk.bf16.gmra.mxu1 %vm189_vm1, %v2106_v26  ;;  %v1907_v26 = vld [vmem:[%s3085_s3 + $0x150] sm:$0xf] }
  0x27   :  { %1688 = vmatmul.msk.bf16.gmra.mxu2 %vm189_vm1, %v2120_v31  ;;  %1704 = vmatmul.msk.bf16.gmra.mxu3 %vm189_vm1, %v2120_v31  ;;  %v1909_v31 = vld [vmem:[%s3085_s3 + $0x158] sm:$0xf0] }
  0x36   :  { %1675 = vmatmul.msk.bf16.gmra.mxu0 %vm189_vm1, %v2107_v27  ;;  %1691 = vmatmul.msk.bf16.gmra.mxu1 %vm189_vm1, %v2107_v27  ;;  %v2170_v27 = vld [vmem:[%s3085_s3 + $0x154] sm:$0xf0] }
  0x46   :  { %1676 = vmatmul.msk.bf16.gmra.mxu0 %vm189_vm1, %v2108_v28  ;;  %1692 = vmatmul.msk.bf16.gmra.mxu1 %vm189_vm1, %v2108_v28  ;;  %v2169_v28 = vld [vmem:[%s3085_s3 + $0x154] sm:$0xf] }
  0x56   :  { %1677 = vmatmul.msk.bf16.gmra.mxu0 %vm189_vm1, %v2109_v30  ;;  %1693 = vmatmul.msk.bf16.gmra.mxu1 %vm189_vm1, %v2109_v30  ;;  %v1908_v30 = vor.u32 %v2170_v27, %v1907_v26  ;;  %v1731_v26 = vld [vmem:[%s3085_s3 + $0x90] sm:$0xf]  ;;  %v2146_v27 = vld [vmem:[%s3085_s3 + $0x94] sm:$0xf0] }
  0x58   :  { %1059 = vmatpush.bf16.msrb.mxu0 %v1908_v30 }
  0x66   :  { %1678 = vmatmul.msk.bf16.gmra.mxu0 %vm189_vm1, %v2110_v32  ;;  %1694 = vmatmul.msk.bf16.gmra.mxu1 %vm189_vm1, %v2110_v32  ;;  %v1912_v32 = vor.u32 %v2169_v28, %v1909_v31  ;;  %v2145_v28 = vld [vmem:[%s3085_s3 + $0x94] sm:$0xf]  ;;  %v1732_v31 = vor.u32 %v2146_v27, %v1731_v26  ;;  %v2163_v26 = vld [vmem:[%s3085_s3 + $0x124] sm:$0xf] }
  0x68   :  { %1108 = vmatpush.bf16.msrb.mxu1 %v1912_v32  ;;  %v1733_v32 = vld [vmem:[%s3085_s3 + $0x98] sm:$0xf0] }
  0x76   :  { %1679 = vmatmul.msk.bf16.gmra.mxu0 %vm189_vm1, %v2111_v33  ;;  %1695 = vmatmul.msk.bf16.gmra.mxu1 %vm189_vm1, %v2111_v33  ;;  %v1763_v33 = vld [vmem:[%s3085_s3 + $0xd0] sm:$0xf] }
  0x86   :  { %1680 = vmatmul.msk.bf16.gmra.mxu0 %vm189_vm1, %v2112_v34  ;;  %1696 = vmatmul.msk.bf16.gmra.mxu1 %vm189_vm1, %v2112_v34  ;;  %v2154_v34 = vld [vmem:[%s3085_s3 + $0xd4] sm:$0xf0] }
  0x93   :  { %v2364_v36 = vpop.f32.mrf.mxu0  ;;  %v2366_v37 = vpop.f32.mrf.mxu1 }
  0x96   :  { %1681 = vmatmul.msk.bf16.gmra.mxu0 %vm189_vm1, %v2113_v35  ;;  %1697 = vmatmul.msk.bf16.gmra.mxu1 %vm189_vm1, %v2113_v35  ;;  %v2153_v35 = vld [vmem:[%s3085_s3 + $0xd4] sm:$0xf] }
  0x97   :  { %v1768_v46 = vor.u32 %v2153_v35, %v1765_v45 }
  0x99   :  { %735 = vmatpush.bf16.msrb.mxu3 %v1768_v46  ;;  %v1723_v46 = vld [vmem:[%s3085_s3 + $0x80] sm:$0xf] }
  0x9a   :  { %v324_v22 = vpop.f32.mrf.mxu2  ;;  %v413_v23 = vpop.f32.mrf.mxu3 }
  0x9b   :  { %v2370_v38 = vpop.f32.mrf.mxu0  ;;  %v2372_v39 = vpop.f32.mrf.mxu1 }
  0x9d   :  { %736 = vmatpush.bf16.msrb.mxu3 %v1760_v1  ;;  %v2167_v1 = vld [vmem:[%s3085_s3 + $0x144] sm:$0xf] }
  0xa1   :  { %737 = vmatpush.bf16.msrb.mxu3 %v1752_v15 }
  0xa2   :  { %v2525_v2 = vpop.f32.mrf.mxu2 }
  0xa3   :  { %v2377_v41 = vpop.f32.mrf.mxu0  ;;  %v2379_v42 = vpop.f32.mrf.mxu1 }
  0xa6   :  { %1682 = vmatmul.msk.bf16.gmra.mxu0 %vm189_vm1, %v2114_v40  ;;  %1698 = vmatmul.msk.bf16.gmra.mxu1 %vm189_vm1, %v2114_v40  ;;  %v1764_v40 = vor.u32 %v2154_v34, %v1763_v33  ;;  %v1736_v33 = vor.u32 %v2145_v28, %v1733_v32  ;;  %v1885_v28 = vld [vmem:[%s3085_s3 + $0x128] sm:$0xf0] }
  0xa7   :  { %v1888_v32 = vor.u32 %v2163_v26, %v1885_v28  ;;  %v2140_v28 = vld [vmem:[%s3085_s3 + $0x64] sm:$0xf0] }
  0xa8   :  { %686 = vmatpush.bf16.msrb.mxu2 %v1764_v40 }
  0xaa   :  { %v329_v29 = vpop.f32.mrf.mxu2 }
  0xab   :  { %v2383_v43 = vpop.f32.mrf.mxu0  ;;  %v2385_v44 = vpop.f32.mrf.mxu1 }
  0xb3   :  { %v2402_v52 = vpop.f32.mrf.mxu0  ;;  %v2404_v53 = vpop.f32.mrf.mxu1 }
  0xb6   :  { %1683 = vmatmul.msk.bf16.gmra.mxu0 %vm189_vm1, %v2115_v51  ;;  %1699 = vmatmul.msk.bf16.gmra.mxu1 %vm189_vm1, %v2115_v51  ;;  %v1755_v51 = vld [vmem:[%s3085_s3 + $0xc0] sm:$0xf] }
  0xbb   :  { %v2408_v54 = vpop.f32.mrf.mxu0  ;;  %v2410_v55 = vpop.f32.mrf.mxu1 }
  0xc3   :  { %v2415_v57 = vpop.f32.mrf.mxu0  ;;  %v2417_v58 = vpop.f32.mrf.mxu1 }
  0xc6   :  { %1684 = vmatmul.msk.bf16.gmra.mxu0 %vm189_vm1, %v2116_v56  ;;  %1700 = vmatmul.msk.bf16.gmra.mxu1 %vm189_vm1, %v2116_v56  ;;  %v2152_v56 = vld [vmem:[%s3085_s3 + $0xc4] sm:$0xf0] }
  0xc7   :  { %v1756_v62 = vor.u32 %v2152_v56, %v1755_v51  ;;  %v1899_v51 = vld [vmem:[%s3085_s3 + $0x140] sm:$0xf]  ;;  %v2168_v56 = vld [vmem:[%s3085_s3 + $0x144] sm:$0xf0] }
  0xc8   :  { %v1900_v63 = vor.u32 %v2168_v56, %v1899_v51 }
  0xc9   :  { %687 = vmatpush.bf16.msrb.mxu2 %v1756_v62 }
  0xca   :  { %1060 = vmatpush.bf16.msrb.mxu0 %v1900_v63  ;;  %v1867_v63 = vld [vmem:[%s3085_s3 + $0x100] sm:$0xf] }
  0xcb   :  { %v2421_v59 = vpop.f32.mrf.mxu0  ;;  %v2423_v60 = vpop.f32.mrf.mxu1 }
  0xd3   :  { %v2440_v4 = vpop.f32.mrf.mxu0  ;;  %v2442_v5 = vpop.f32.mrf.mxu1 }
  0xd6   :  { %1685 = vmatmul.msk.bf16.gmra.mxu0 %vm189_vm1, %v2117_v3  ;;  %1701 = vmatmul.msk.bf16.gmra.mxu1 %vm189_vm1, %v2117_v3  ;;  %v2527_v3 = vpop.f32.mrf.mxu3 }
  0xdb   :  { %v2446_v6 = vpop.f32.mrf.mxu0  ;;  %v2448_v7 = vpop.f32.mrf.mxu1 }
  0xde   :  { %v418_v30 = vpop.f32.mrf.mxu3 }
  0xe3   :  { %v2453_v9 = vpop.f32.mrf.mxu0  ;;  %v2455_v10 = vpop.f32.mrf.mxu1 }
  0xe6   :  { %1686 = vmatmul.msk.bf16.gmra.mxu0 %vm189_vm1, %v2118_v8  ;;  %1702 = vmatmul.msk.bf16.gmra.mxu1 %vm189_vm1, %v2118_v8  ;;  %v1747_v8 = vld [vmem:[%s3085_s3 + $0xb0] sm:$0xf] }
  0xe7   :  { %v1748_v13 = vor.u32 %v2150_v11, %v1747_v8  ;;  %v1901_v8 = vld [vmem:[%s3085_s3 + $0x148] sm:$0xf0] }
  0xe8   :  { %v1904_v11 = vor.u32 %v2167_v1, %v1901_v8  ;;  %v2160_v1 = vld [vmem:[%s3085_s3 + $0x104] sm:$0xf0]  ;;  %v2159_v8 = vld [vmem:[%s3085_s3 + $0x104] sm:$0xf] }
  0xe9   :  { %688 = vmatpush.bf16.msrb.mxu2 %v1748_v13  ;;  %v2166_v13 = vld [vmem:[%s3085_s3 + $0x134] sm:$0xf0] }
  0xea   :  { %1109 = vmatpush.bf16.msrb.mxu1 %v1904_v11  ;;  %v1892_v15 = vor.u32 %v2166_v13, %v1891_v12  ;;  %v1868_v11 = vor.u32 %v2160_v1, %v1867_v63  ;;  %v2664_v13 = vld [vmem:[%s3084_s2] ss:$0 sm:$0xff] }
  0xeb   :  { %v2471_v17 = vpop.f32.mrf.mxu0  ;;  %v2473_v18 = vpop.f32.mrf.mxu1 }
  0xec   :  { %1061 = vmatpush.bf16.msrb.mxu0 %v1892_v15 }
  0xf3   :  { %v284_v47 = vpop.f32.mrf.mxu0  ;;  %v373_v48 = vpop.f32.mrf.mxu1 }
  0xf4   :  { %v447_v49 = vmax.f32 %v284_v47, %v324_v22  ;;  %v448_v50 = vmax.f32 %v373_v48, %v413_v23  ;;  %v2147_v22 = vld [vmem:[%s3085_s3 + $0xa4] sm:$0xf]  ;;  %v1740_v23 = vor.u32 %v2148_v21, %v1739_v20  ;;  %v2144_v47 = vld [vmem:[%s3085_s3 + $0x84] sm:$0xf0]  ;;  %v1893_v20 = vld [vmem:[%s3085_s3 + $0x138] sm:$0xf0] }
  0xf5   :  { %v1744_v25 = vor.u32 %v2147_v22, %v1741_v24  ;;  %v2143_v48 = vld [vmem:[%s3085_s3 + $0x84] sm:$0xf]  ;;  %v1896_v21 = vor.u32 %v2165_v14, %v1893_v20  ;;  %v1883_v24 = vld [vmem:[%s3085_s3 + $0x120] sm:$0xf] }
  0xf6   :  { %v2523_v0 = vmax.f32 %v447_v49, %v448_v50  ;;  %689 = vmatpush.bf16.msrb.mxu2 %v1740_v23  ;;  %v1724_v49 = vor.u32 %v2144_v47, %v1723_v46  ;;  %v1725_v50 = vld [vmem:[%s3085_s3 + $0x88] sm:$0xf0]  ;;  %v2161_v46 = vld [vmem:[%s3085_s3 + $0x114] sm:$0xf] }
  0xf7   :  { %738 = vmatpush.bf16.msrb.mxu3 %v1744_v25  ;;  %v1728_v62 = vor.u32 %v2143_v48, %v1725_v50  ;;  %v2164_v25 = vld [vmem:[%s3085_s3 + $0x124] sm:$0xf0]  ;;  %1110 = vmatpush.bf16.msrb.mxu1 %v1896_v21  ;;  %v1877_v48 = vld [vmem:[%s3085_s3 + $0x118] sm:$0xf0] }
  0xf8   :  { %v1884_v27 = vor.u32 %v2164_v25, %v1883_v24 }
  0xfa   :  { %690 = vmatpush.bf16.msrb.mxu2 %v1732_v31  ;;  %v2141_v31 = vld [vmem:[%s3085_s3 + $0x74] sm:$0xf]  ;;  %1062 = vmatpush.bf16.msrb.mxu0 %v1884_v27  ;;  %v1835_v27 = vld [vmem:[%s3085_s3 + $0x60] sm:$0xf] }
  0xfb   :  { %v2541_v16 = vpop.f32.mrf.mxu0  ;;  %v2543_v19 = vpop.f32.mrf.mxu1  ;;  %739 = vmatpush.bf16.msrb.mxu3 %v1736_v33  ;;  %1111 = vmatpush.bf16.msrb.mxu1 %v1888_v32 }
  0xfe   :  { %691 = vmatpush.bf16.msrb.mxu2 %v1724_v49  ;;  %v1880_v49 = vor.u32 %v2161_v46, %v1877_v48 }
  0xff   :  { %740 = vmatpush.bf16.msrb.mxu3 %v1728_v62 }
 0x100   :  { %1112 = vmatpush.bf16.msrb.mxu1 %v1880_v49 }
 0x103   :  { %v289_v34 = vpop.f32.mrf.mxu0  ;;  %v378_v35 = vpop.f32.mrf.mxu1 }
 0x104   :  { %v451_v40 = vmax.f32 %v289_v34, %v329_v29  ;;  %v452_v45 = vmax.f32 %v378_v35, %v418_v30  ;;  %v1843_v29 = vld [vmem:[%s3085_s3 + $0x70] sm:$0xf]  ;;  %v2142_v30 = vld [vmem:[%s3085_s3 + $0x74] sm:$0xf0]  ;;  %v1845_v34 = vld [vmem:[%s3085_s3 + $0x78] sm:$0xf0] }
 0x105   :  { %v1844_v33 = vor.u32 %v2142_v30, %v1843_v29  ;;  %v1848_v35 = vor.u32 %v2141_v31, %v1845_v34  ;;  %v2139_v29 = vld [vmem:[%s3085_s3 + $0x64] sm:$0xf]  ;;  %v1836_v30 = vor.u32 %v2140_v28, %v1835_v27 }
 0x106   :  { %v2587_v61 = vmax.f32 %v451_v40, %v452_v45  ;;  %v1875_v40 = vld [vmem:[%s3085_s3 + $0x110] sm:$0xf]  ;;  %v2162_v45 = vld [vmem:[%s3085_s3 + $0x114] sm:$0xf0] }
 0x107   :  { %862 = vmatpush.bf16.msra.mxu2 %v1844_v33  ;;  %v1876_v47 = vor.u32 %v2162_v45, %v1875_v40  ;;  %911 = vmatpush.bf16.msra.mxu3 %v1848_v35 }
 0x109   :  { %1063 = vmatpush.bf16.msrb.mxu0 %v1876_v47 }
 0x10b   :  { %v2607_v22 = vpop.f32.mrf.mxu0  ;;  %v2609_v23 = vpop.f32.mrf.mxu1  ;;  %863 = vmatpush.bf16.msra.mxu2 %v1836_v30 }
 0x10d   :  { %1064 = vmatpush.bf16.msrb.mxu0 %v1868_v11  ;;  %v2138_v11 = vld [vmem:[%s3085_s3 + $0x54] sm:$0xf0] }
 0x113   :  { %v294_v50 = vpop.f32.mrf.mxu0  ;;  %v383_v51 = vpop.f32.mrf.mxu1 }
 0x114   :  { %v423_v56 = vmax.f32 %v2364_v36, %v294_v50  ;;  %v424_v62 = vmax.f32 %v2366_v37, %v383_v51  ;;  %v1869_v36 = vld [vmem:[%s3085_s3 + $0x108] sm:$0xf0] }
 0x115   :  { %v1872_v12 = vor.u32 %v2159_v8, %v1869_v36  ;;  %v2137_v36 = vld [vmem:[%s3085_s3 + $0x54] sm:$0xf] }
 0x116   :  { %v455_v37 = vmax.f32 %v423_v56, %v424_v62 }
 0x117   :  { %1113 = vmatpush.bf16.msrb.mxu1 %v1872_v12 }
 0x118   :  { %v475_v14 = vadd.f32 %v2664_v13, %v455_v37 }
 0x11a   :  { %v491_v25 = vmax.f32 %v475_v14, 0.0 }
 0x11b   :  { %v296_v15 = vpop.f32.mrf.mxu0  ;;  %v385_v20 = vpop.f32.mrf.mxu1 }
 0x11c   :  { %v425_v21 = vmax.f32 %v2370_v38, %v296_v15  ;;  %v426_v24 = vmax.f32 %v2372_v39, %v385_v20  ;;  %v1837_v38 = vld [vmem:[%s3085_s3 + $0x68] sm:$0xf0]  ;;  %v507_v32 = vpack.c.bf16 %v491_v25, %v491_v25 }
 0x11d   :  { %v1840_v31 = vor.u32 %v2139_v29, %v1837_v38 }
 0x11e   :  { %v456_v26 = vmax.f32 %v425_v21, %v426_v24  ;;  %v539_v47 = vunpack.c.l.b16 %v507_v32 }
 0x11f   :  { %912 = vmatpush.bf16.msra.mxu3 %v1840_v31 }
 0x120   :  { %v476_v39 = vadd.f32 %v2664_v13, %v456_v26 }
 0x122   :  { %v492_v33 = vmax.f32 %v476_v39, 0.0 }
 0x123   :  { %v299_v34 = vpop.f32.mrf.mxu0  ;;  %v388_v35 = vpop.f32.mrf.mxu1 }
 0x124   :  { %v508_v40 = vpack.c.bf16 %v492_v33, %v492_v33  ;;  %v427_v45 = vmax.f32 %v2377_v41, %v299_v34  ;;  %v428_v46 = vmax.f32 %v2379_v42, %v388_v35  ;;  %v1827_v42 = vld [vmem:[%s3085_s3 + $0x50] sm:$0xf]  ;;  %v1819_v34 = vld [vmem:[%s3085_s3 + $0x40] sm:$0xf]  ;;  %v2136_v35 = vld [vmem:[%s3085_s3 + $0x44] sm:$0xf0] }
 0x125   :  { %v1828_v37 = vor.u32 %v2138_v11, %v1827_v42 }
 0x126   :  { %v540_v48 = vunpack.c.l.b16 %v508_v40  ;;  %v457_v49 = vmax.f32 %v427_v45, %v428_v46  ;;  %v2135_v40 = vld [vmem:[%s3085_s3 + $0x44] sm:$0xf]  ;;  %v1820_v45 = vor.u32 %v2136_v35, %v1819_v34 }
 0x127   :  { %864 = vmatpush.bf16.msra.mxu2 %v1828_v37 }
 0x128   :  { %v2684_v50 = vpack.c.b16 %v540_v48, %v539_v47  ;;  %v477_v51 = vadd.f32 %v2664_v13, %v457_v49 }
 0x12a   :  { %692 = vmatmul.bf16.vlgmr.msrb.gmra.mxu2 %v2684_v50  ;;  %741 = vmatmul.bf16.vlgmr.msrb.gmra.mxu3 %v2684_v50  ;;  %v493_v41 = vmax.f32 %v477_v51, 0.0 }
 0x12b   :  { %v301_v56 = vpop.f32.mrf.mxu0  ;;  %v390_v62 = vpop.f32.mrf.mxu1  ;;  %865 = vmatpush.bf16.msra.mxu2 %v1820_v45  ;;  %v1805_v45 = vld [vmem:[%s3085_s3 + $0x28] sm:$0xf0] }
 0x12c   :  { %v429_v63 = vmax.f32 %v2383_v43, %v301_v56  ;;  %v430_v1 = vmax.f32 %v2385_v44, %v390_v62  ;;  %v1829_v43 = vld [vmem:[%s3085_s3 + $0x58] sm:$0xf0]  ;;  %v509_v14 = vpack.c.bf16 %v493_v41, %v493_v41 }
 0x12d   :  { %v1832_v12 = vor.u32 %v2137_v36, %v1829_v43 }
 0x12e   :  { %v458_v8 = vmax.f32 %v429_v63, %v430_v1  ;;  %v541_v27 = vunpack.c.l.b16 %v509_v14  ;;  %v2134_v14 = vld [vmem:[%s3085_s3 + $0x34] sm:$0xf0] }
 0x12f   :  { %913 = vmatpush.bf16.msra.mxu3 %v1832_v12  ;;  %v1811_v12 = vld [vmem:[%s3085_s3 + $0x30] sm:$0xf] }
 0x130   :  { %v478_v44 = vadd.f32 %v2664_v13, %v458_v8 }
 0x132   :  { %v494_v15 = vmax.f32 %v478_v44, 0.0 }
 0x133   :  { %v304_v20 = vpop.f32.mrf.mxu0  ;;  %v393_v21 = vpop.f32.mrf.mxu1 }
 0x134   :  { %v510_v24 = vpack.c.bf16 %v494_v15, %v494_v15  ;;  %v431_v25 = vmax.f32 %v2402_v52, %v304_v20  ;;  %v432_v26 = vmax.f32 %v2404_v53, %v393_v21  ;;  %v2133_v15 = vld [vmem:[%s3085_s3 + $0x34] sm:$0xf]  ;;  %v1812_v20 = vor.u32 %v2134_v14, %v1811_v12  ;;  %v1797_v12 = vld [vmem:[%s3085_s3 + $0x18] sm:$0xf0] }
 0x136   :  { %v542_v28 = vunpack.c.l.b16 %v510_v24  ;;  %v459_v29 = vmax.f32 %v431_v25, %v432_v26  ;;  %866 = vmatpush.bf16.msra.mxu2 %v1812_v20 }
 0x138   :  { %v2706_v30 = vpack.c.b16 %v542_v28, %v541_v27  ;;  %v479_v38 = vadd.f32 %v2664_v13, %v459_v29 }
 0x13a   :  { %697 = vmatmul.bf16.gmra.mxu2 %v2706_v30  ;;  %746 = vmatmul.bf16.gmra.mxu3 %v2706_v30  ;;  %v495_v32 = vmax.f32 %v479_v38, 0.0 }
 0x13b   :  { %1065 = vmatmul.bf16.vlgmr.msrb.gmra.mxu0 %v2706_v30  ;;  %1114 = vmatmul.bf16.vlgmr.msrb.gmra.mxu1 %v2706_v30  ;;  %v306_v39 = vpop.f32.mrf.mxu0  ;;  %v395_v31 = vpop.f32.mrf.mxu1 }
 0x13c   :  { %v433_v52 = vmax.f32 %v2408_v54, %v306_v39  ;;  %v434_v53 = vmax.f32 %v2410_v55, %v395_v31  ;;  %v1821_v54 = vld [vmem:[%s3085_s3 + $0x48] sm:$0xf0]  ;;  %v511_v47 = vpack.c.bf16 %v495_v32, %v495_v32 }
 0x13d   :  { %v1824_v46 = vor.u32 %v2135_v40, %v1821_v54  ;;  %v2131_v40 = vld [vmem:[%s3085_s3 + $0x24] sm:$0xf] }
 0x13e   :  { %v460_v33 = vmax.f32 %v433_v52, %v434_v53  ;;  %v543_v1 = vunpack.c.l.b16 %v511_v47 }
 0x13f   :  { %914 = vmatpush.bf16.msra.mxu3 %v1824_v46  ;;  %v1808_v46 = vor.u32 %v2131_v40, %v1805_v45 }
 0x140   :  { %v480_v55 = vadd.f32 %v2664_v13, %v460_v33  ;;  %v1803_v33 = vld [vmem:[%s3085_s3 + $0x20] sm:$0xf] }
 0x142   :  { %v496_v48 = vmax.f32 %v480_v55, 0.0 }
 0x143   :  { %v309_v49 = vpop.f32.mrf.mxu0  ;;  %v398_v51 = vpop.f32.mrf.mxu1 }
 0x144   :  { %v512_v56 = vpack.c.bf16 %v496_v48, %v496_v48  ;;  %v435_v62 = vmax.f32 %v2415_v57, %v309_v49  ;;  %v436_v63 = vmax.f32 %v2417_v58, %v398_v51 }
 0x146   :  { %v544_v41 = vunpack.c.l.b16 %v512_v56  ;;  %v461_v8 = vmax.f32 %v435_v62, %v436_v63 }
 0x148   :  { %v2730_v42 = vpack.c.b16 %v544_v41, %v543_v1  ;;  %v481_v11 = vadd.f32 %v2664_v13, %v461_v8 }
 0x14a   :  { %702 = vmatmul.bf16.gmra.mxu2 %v2730_v42  ;;  %751 = vmatmul.bf16.gmra.mxu3 %v2730_v42  ;;  %v497_v43 = vmax.f32 %v481_v11, 0.0 }
 0x14b   :  { %1070 = vmatmul.bf16.gmra.mxu0 %v2730_v42  ;;  %1119 = vmatmul.bf16.gmra.mxu1 %v2730_v42  ;;  %v311_v36 = vpop.f32.mrf.mxu0  ;;  %v400_v37 = vpop.f32.mrf.mxu1 }
 0x14c   :  { %v437_v57 = vmax.f32 %v2421_v59, %v311_v36  ;;  %v438_v58 = vmax.f32 %v2423_v60, %v400_v37  ;;  %v1813_v59 = vld [vmem:[%s3085_s3 + $0x38] sm:$0xf0]  ;;  %v513_v24 = vpack.c.bf16 %v497_v43, %v497_v43 }
 0x14d   :  { %v1816_v21 = vor.u32 %v2133_v15, %v1813_v59 }
 0x14e   :  { %v462_v44 = vmax.f32 %v437_v57, %v438_v58  ;;  %v545_v39 = vunpack.c.l.b16 %v513_v24  ;;  %v1795_v57 = vld [vmem:[%s3085_s3 + $0x10] sm:$0xf]  ;;  %v450_v24 = vmax.f32 %v2543_v19, %v2527_v3  ;;  %v2128_v3 = vld [vmem:[%s3085_s3 + $0x4] sm:$0xf0]  ;;  %v1789_v19 = vld [vmem:[%s3085_s3 + $0x8] sm:$0xf0] }
 0x14f   :  { %915 = vmatpush.bf16.msra.mxu3 %v1816_v21  ;;  %v449_v21 = vmax.f32 %v2541_v16, %v2525_v2  ;;  %v1787_v2 = vld [vmem:[%s3085_s3] sm:$0xf]  ;;  %v2127_v16 = vld [vmem:[%s3085_s3 + $0x4] sm:$0xf] }
 0x150   :  { %v482_v60 = vadd.f32 %v2664_v13, %v462_v44  ;;  %v2129_v44 = vld [vmem:[%s3085_s3 + $0x14] sm:$0xf] }
 0x151   :  { %v1800_v20 = vor.u32 %v2129_v44, %v1797_v12 }
 0x152   :  { %v498_v25 = vmax.f32 %v482_v60, 0.0 }
 0x153   :  { %v314_v26 = vpop.f32.mrf.mxu0  ;;  %v403_v27 = vpop.f32.mrf.mxu1  ;;  %916 = vmatpush.bf16.msra.mxu3 %v1808_v46 }
 0x154   :  { %v514_v28 = vpack.c.bf16 %v498_v25, %v498_v25  ;;  %v439_v29 = vmax.f32 %v2440_v4, %v314_v26  ;;  %v440_v38 = vmax.f32 %v2442_v5, %v403_v27  ;;  %v2132_v4 = vld [vmem:[%s3085_s3 + $0x24] sm:$0xf0] }
 0x155   :  { %v1804_v35 = vor.u32 %v2132_v4, %v1803_v33  ;;  %v331_v33 = vpop.f32.mrf.mxu2  ;;  %v420_v4 = vpop.f32.mrf.mxu3 }
 0x156   :  { %v546_v31 = vunpack.c.l.b16 %v514_v28  ;;  %v463_v52 = vmax.f32 %v439_v29, %v440_v38  ;;  %v468_v28 = vmax.f32 %v449_v21, %v450_v24  ;;  %v454_v40 = vmax.f32 %v2609_v23, %v420_v4  ;;  %v2182_v21 = vld [vmem:[%s3087_s5 + $0x38] sm:$0xff] }
 0x157   :  { %867 = vmatpush.bf16.msra.mxu2 %v1804_v35  ;;  %917 = vmatpush.bf16.msra.mxu3 %v1800_v20  ;;  %v453_v35 = vmax.f32 %v2607_v22, %v331_v33 }
 0x158   :  { %v2754_v53 = vpack.c.b16 %v546_v31, %v545_v39  ;;  %v483_v32 = vadd.f32 %v2664_v13, %v463_v52  ;;  %v487_v31 = vadd.f32 %v2664_v13, %v2523_v0  ;;  %v1788_v0 = vor.u32 %v2128_v3, %v1787_v2  ;;  %v2180_v2 = vld [vmem:[%s3087_s5 + $0x28] sm:$0xff] }
 0x15a   :  { %707 = vmatmul.bf16.gmra.mxu2 %v2754_v53  ;;  %756 = vmatmul.bf16.gmra.mxu3 %v2754_v53  ;;  %v499_v47 = vmax.f32 %v483_v32, 0.0  ;;  %v1792_v32 = vor.u32 %v2127_v16, %v1789_v19  ;;  %v2178_v19 = vld [vmem:[%s3087_s5 + $0x18] sm:$0xff] }
 0x15b   :  { %1075 = vmatmul.bf16.gmra.mxu0 %v2754_v53  ;;  %1124 = vmatmul.bf16.gmra.mxu1 %v2754_v53  ;;  %v316_v5 = vpop.f32.mrf.mxu0  ;;  %v405_v34 = vpop.f32.mrf.mxu1 }
 0x15c   :  { %v441_v54 = vmax.f32 %v2446_v6, %v316_v5  ;;  %v442_v55 = vmax.f32 %v2448_v7, %v405_v34  ;;  %v515_v51 = vpack.c.bf16 %v499_v47, %v499_v47  ;;  %v503_v5 = vmax.f32 %v487_v31, 0.0  ;;  %918 = vmatpush.bf16.msra.mxu3 %v1792_v32 }
 0x15e   :  { %v464_v48 = vmax.f32 %v441_v54, %v442_v55  ;;  %v547_v11 = vunpack.c.l.b16 %v515_v51  ;;  %v519_v45 = vpack.c.bf16 %v503_v5, %v503_v5  ;;  %v470_v55 = vmax.f32 %v453_v35, %v454_v40  ;;  %v2188_v5 = vld [vmem:[%s3087_s5 + $0x68] sm:$0xff] }
 0x15f   :  { %v2176_v35 = vld [vmem:[%s3087_s5 + $0x8] sm:$0xff] }
 0x160   :  { %v484_v49 = vadd.f32 %v2664_v13, %v464_v48  ;;  %v551_v46 = vunpack.c.l.b16 %v519_v45  ;;  %v490_v48 = vadd.f32 %v2664_v13, %v470_v55  ;;  %1356 = vmatpush.bf16.msrb.mxu3 %v2182_v21 }
 0x162   :  { %v500_v56 = vmax.f32 %v484_v49, 0.0  ;;  %v489_v49 = vadd.f32 %v2664_v13, %v2587_v61  ;;  %v506_v22 = vmax.f32 %v490_v48, 0.0  ;;  %v2221_v61 = vmov 0  }
 0x163   :  { %v319_v62 = vpop.f32.mrf.mxu0  ;;  %v408_v63 = vpop.f32.mrf.mxu1 }
 0x164   :  { %v516_v1 = vpack.c.bf16 %v500_v56, %v500_v56  ;;  %v443_v41 = vmax.f32 %v2453_v9, %v319_v62  ;;  %v444_v8 = vmax.f32 %v2455_v10, %v408_v63  ;;  %v2130_v9 = vld [vmem:[%s3085_s3 + $0x14] sm:$0xf0]  ;;  %v505_v23 = vmax.f32 %v489_v49, 0.0 }
 0x165   :  { %v1796_v43 = vor.u32 %v2130_v9, %v1795_v57  ;;  %v522_v51 = vpack.c.bf16 %v506_v22, %v506_v22 }
 0x166   :  { %v548_v6 = vunpack.c.l.b16 %v516_v1  ;;  %v465_v36 = vmax.f32 %v443_v41, %v444_v8  ;;  %v521_v56 = vpack.c.bf16 %v505_v23, %v505_v23 }
 0x167   :  { %868 = vmatpush.bf16.msra.mxu2 %v1796_v43  ;;  %v554_v62 = vunpack.c.l.b16 %v522_v51 }
 0x168   :  { %v2778_v7 = vpack.c.b16 %v548_v6, %v547_v11  ;;  %v485_v37 = vadd.f32 %v2664_v13, %v465_v36  ;;  %v553_v63 = vunpack.c.l.b16 %v521_v56 }
 0x16a   :  { %712 = vmatmul.bf16.gmra.mxu2 %v2778_v7  ;;  %761 = vmatmul.bf16.gmra.mxu3 %v2778_v7  ;;  %v501_v59 = vmax.f32 %v485_v37, 0.0  ;;  %v562_v1 = vpack.c.b16 %v554_v62, %v553_v63 }
 0x16b   :  { %1080 = vmatmul.bf16.gmra.mxu0 %v2778_v7  ;;  %1129 = vmatmul.bf16.gmra.mxu1 %v2778_v7  ;;  %v321_v10 = vpop.f32.mrf.mxu0  ;;  %v410_v58 = vpop.f32.mrf.mxu1 }
 0x16c   :  { %v445_v14 = vmax.f32 %v2471_v17, %v321_v10  ;;  %v446_v15 = vmax.f32 %v2473_v18, %v410_v58  ;;  %v517_v26 = vpack.c.bf16 %v501_v59, %v501_v59  ;;  %v488_v18 = vadd.f32 %v2664_v13, %v468_v28  ;;  %869 = vmatpush.bf16.msra.mxu2 %v1788_v0  ;;  %v2181_v28 = vld [vmem:[%s3087_s5 + $0x30] sm:$0xff]  ;;  %v2179_v0 = vld [vmem:[%s3087_s5 + $0x20] sm:$0xff] }
 0x16d   :  { %1357 = vmatpush.bf16.msrb.mxu3 %v2181_v28 }
 0x16e   :  { %v466_v60 = vmax.f32 %v445_v14, %v446_v15  ;;  %v549_v17 = vunpack.c.l.b16 %v517_v26  ;;  %v504_v52 = vmax.f32 %v488_v18, 0.0 }
 0x170   :  { %v486_v25 = vadd.f32 %v2664_v13, %v466_v60  ;;  %v520_v34 = vpack.c.bf16 %v504_v52, %v504_v52 }
 0x171   :  { %1358 = vmatpush.bf16.msrb.mxu3 %v2180_v2 }
 0x172   :  { %v502_v27 = vmax.f32 %v486_v25, 0.0  ;;  %v552_v54 = vunpack.c.l.b16 %v520_v34  ;;  %v2177_v34 = vld [vmem:[%s3087_s5 + $0x10] sm:$0xff] }
 0x174   :  { %v518_v29 = vpack.c.bf16 %v502_v27, %v502_v27  ;;  %v2827_v47 = vpack.c.b16 %v552_v54, %v551_v46  ;;  %v2189_v27 = vld [vmem:[%s3087_s5 + $0x70] sm:$0xff]  ;;  %v2175_v46 = vld [vmem:[%s3087_s5] sm:$0xff] }
 0x175   :  { %1359 = vmatpush.bf16.msrb.mxu3 %v2179_v0 }
 0x176   :  { %v550_v38 = vunpack.c.l.b16 %v518_v29 }
 0x178   :  { %v2805_v39 = vpack.c.b16 %v550_v38, %v549_v17 }
 0x179   :  { %1360 = vmatpush.bf16.msrb.mxu3 %v2178_v19 }
 0x17a   :  { %717 = vmatmul.bf16.gmra.mxu2 %v2805_v39  ;;  %766 = vmatmul.bf16.gmra.mxu3 %v2805_v39 }
 0x17b   :  { %1085 = vmatmul.bf16.gmra.mxu0 %v2805_v39  ;;  %1134 = vmatmul.bf16.gmra.mxu1 %v2805_v39 }
 0x17d   :  { %1361 = vmatpush.bf16.msrb.mxu3 %v2177_v34 }
 0x181   :  { %1362 = vmatpush.bf16.msrb.mxu3 %v2176_v35 }
 0x185   :  { %1363 = vmatpush.bf16.msrb.mxu3 %v2175_v46 }
 0x18a   :  { %722 = vmatmul.bf16.gmra.mxu2 %v2827_v47  ;;  %771 = vmatmul.bf16.gmra.mxu3 %v2827_v47 }
 0x18b   :  { %1090 = vmatmul.bf16.gmra.mxu0 %v2827_v47  ;;  %1139 = vmatmul.bf16.gmra.mxu1 %v2827_v47 }
 0x19a   :  { %727 = vmatmul.bf16.gmra.mxu2 %v562_v1  ;;  %776 = vmatmul.bf16.gmra.mxu3 %v562_v1 }
 0x19b   :  { %1095 = vmatmul.bf16.gmra.mxu0 %v562_v1  ;;  %1144 = vmatmul.bf16.gmra.mxu1 %v562_v1 }
 0x1aa   :  { %870 = vmatmul.bf16.vlgmr.msra.gmra.mxu2 %v2221_v61  ;;  %919 = vmatmul.bf16.vlgmr.msra.gmra.mxu3 %v2221_v61 }
 0x1ab   :  { %1100 = vmatmul.bf16.gmra.mxu0 %v2221_v61  ;;  %1149 = vmatmul.bf16.gmra.mxu1 %v2221_v61 }
 0x1ad   :  { %v2836_v13 = vpop.f32.mrf.mxu2  ;;  %v2838_v41 = vpop.f32.mrf.mxu3 }
 0x1b5   :  { %v2840_v8 = vpop.f32.mrf.mxu2  ;;  %v2842_v11 = vpop.f32.mrf.mxu3 }
 0x1b8   :  { %v1066_v29 = vpop.f32.mrf.mxu0  ;;  %v1115_v17 = vpop.f32.mrf.mxu1 }
 0x1ba   :  { %875 = vmatmul.bf16.gmra.mxu2 %v2684_v50  ;;  %924 = vmatmul.bf16.gmra.mxu3 %v2684_v50 }
 0x1bd   :  { %v2846_v6 = vpop.f32.mrf.mxu2  ;;  %v2848_v36 = vpop.f32.mrf.mxu3 }
 0x1c0   :  { %v1117_v31 = vpop.f32.mrf.mxu1 }
 0x1c5   :  { %v2850_v37 = vpop.f32.mrf.mxu2  ;;  %v2852_v57 = vpop.f32.mrf.mxu3 }
 0x1c8   :  { %v1120_v4 = vpop.f32.mrf.mxu1 }
 0x1ca   :  { %880 = vmatmul.bf16.gmra.mxu2 %v2706_v30  ;;  %929 = vmatmul.bf16.gmra.mxu3 %v2706_v30 }
 0x1cd   :  { %v2856_v9 = vpop.f32.mrf.mxu2  ;;  %v2858_v10 = vpop.f32.mrf.mxu3 }
 0x1d0   :  { %v1122_v55 = vpop.f32.mrf.mxu1 }
 0x1d5   :  { %v2860_v58 = vpop.f32.mrf.mxu2  ;;  %v2862_v43 = vpop.f32.mrf.mxu3 }
 0x1d8   :  { %v2952_v23 = vpop.f32.mrf.mxu1 }
 0x1da   :  { %885 = vmatmul.bf16.gmra.mxu2 %v2730_v42  ;;  %934 = vmatmul.bf16.gmra.mxu3 %v2730_v42 }
 0x1dd   :  { %v2866_v50 = vpop.f32.mrf.mxu2  ;;  %v2868_v44 = vpop.f32.mrf.mxu3 }
 0x1e0   :  { %v2961_v19 = vpop.f32.mrf.mxu1 }
 0x1e5   :  { %v2870_v12 = vpop.f32.mrf.mxu2  ;;  %v2872_v14 = vpop.f32.mrf.mxu3 }
 0x1ea   :  { %890 = vmatmul.bf16.gmra.mxu2 %v2754_v53  ;;  %939 = vmatmul.bf16.gmra.mxu3 %v2754_v53  ;;  %v2190_v53 = vld [vmem:[%s3087_s5 + $0x78] sm:$0xff] }
 0x1eb   :  { %1294 = vmatpush.bf16.msrb.mxu2 %v2190_v53 }
 0x1ed   :  { %v2876_v30 = vpop.f32.mrf.mxu2  ;;  %v2878_v15 = vpop.f32.mrf.mxu3 }
 0x1ef   :  { %1295 = vmatpush.bf16.msrb.mxu2 %v2189_v27 }
 0x1f3   :  { %1296 = vmatpush.bf16.msrb.mxu2 %v2188_v5 }
 0x1f5   :  { %v2880_v20 = vpop.f32.mrf.mxu2  ;;  %v2882_v59 = vpop.f32.mrf.mxu3 }
 0x1fa   :  { %895 = vmatmul.bf16.gmra.mxu2 %v2778_v7  ;;  %944 = vmatmul.bf16.gmra.mxu3 %v2778_v7 }
 0x1fd   :  { %v2886_v42 = vpop.f32.mrf.mxu2  ;;  %v2888_v60 = vpop.f32.mrf.mxu3 }
 0x205   :  { %v2896_v24 = vpop.f32.mrf.mxu2  ;;  %v2898_v25 = vpop.f32.mrf.mxu3 }
 0x20a   :  { %900 = vmatmul.bf16.gmra.mxu2 %v2805_v39  ;;  %949 = vmatmul.bf16.gmra.mxu3 %v2805_v39  ;;  %v1068_v39 = vpop.f32.mrf.mxu0 }
 0x20d   :  { %v2902_v7 = vpop.f32.mrf.mxu2  ;;  %v2904_v26 = vpop.f32.mrf.mxu3 }
 0x212   :  { %v1071_v33 = vpop.f32.mrf.mxu0 }
 0x215   :  { %v2912_v38 = vpop.f32.mrf.mxu2  ;;  %v2914_v18 = vpop.f32.mrf.mxu3 }
 0x21a   :  { %905 = vmatmul.bf16.gmra.mxu2 %v2827_v47  ;;  %954 = vmatmul.bf16.gmra.mxu3 %v2827_v47  ;;  %v1073_v54 = vpop.f32.mrf.mxu0  ;;  %v2187_v47 = vld [vmem:[%s3087_s5 + $0x60] sm:$0xff] }
 0x21b   :  { %1297 = vmatpush.bf16.msrb.mxu2 %v2187_v47 }
 0x21d   :  { %v2921_v3 = vpop.f32.mrf.mxu2  ;;  %v2923_v16 = vpop.f32.mrf.mxu3 }
 0x222   :  { %v2950_v22 = vpop.f32.mrf.mxu0 }
 0x225   :  { %v2931_v52 = vpop.f32.mrf.mxu2  ;;  %v2933_v32 = vpop.f32.mrf.mxu3 }
 0x22a   :  { %v2959_v0 = vpop.f32.mrf.mxu0 }
 0x22d   :  { %v871_v40 = vpop.f32.mrf.mxu2  ;;  %v920_v45 = vpop.f32.mrf.mxu3 }
 0x22e   :  { %v872_v62 = vadd.f32 %v871_v40, %v2836_v13  ;;  %v921_v63 = vadd.f32 %v920_v45, %v2838_v41  ;;  %v2186_v41 = vld [vmem:[%s3087_s5 + $0x58] sm:$0xff]  ;;  %v2185_v45 = vld [vmem:[%s3087_s5 + $0x50] sm:$0xff] }
 0x22f   :  { %1298 = vmatpush.bf16.msrb.mxu2 %v2186_v41 }
 0x230   :  { %v1155_v27 = vadd.f32 %v1066_v29, %v872_v62  ;;  %v1156_v28 = vadd.f32 %v1115_v17, %v921_v63  ;;  %v2183_v62 = vld [vmem:[%s3087_s5 + $0x40] sm:$0xff] }
 0x233   :  { %1299 = vmatpush.bf16.msrb.mxu2 %v2185_v45  ;;  %v2194_v45 = vld [vmem:[%s3087_s5 + $0x98] sm:$0xff] }
 0x235   :  { %v873_v48 = vpop.f32.mrf.mxu2  ;;  %v922_v49 = vpop.f32.mrf.mxu3 }
 0x236   :  { %v874_v2 = vadd.f32 %v873_v48, %v2840_v8  ;;  %v923_v5 = vadd.f32 %v922_v49, %v2842_v11  ;;  %v2972_v11 = vld [vmem:[%s3086_s4] ss:$0 sm:$0xff]  ;;  %v1081_v49 = vpop.f32.mrf.mxu0 }
 0x238   :  { %v1157_v8 = vadd.f32 %v1068_v39, %v874_v2  ;;  %v1158_v17 = vadd.f32 %v1117_v31, %v923_v5  ;;  %v2184_v39 = vld [vmem:[%s3087_s5 + $0x48] sm:$0xff] }
 0x239   :  { %1300 = vmatpush.bf16.msrb.mxu2 %v2184_v39  ;;  %v2196_v2 = vld [vmem:[%s3087_s5 + $0xa8] sm:$0xff] }
 0x23d   :  { %v876_v51 = vpop.f32.mrf.mxu2  ;;  %v925_v56 = vpop.f32.mrf.mxu3  ;;  %1301 = vmatpush.bf16.msrb.mxu2 %v2183_v62 }
 0x23e   :  { %v877_v1 = vadd.f32 %v876_v51, %v2846_v6  ;;  %v926_v61 = vadd.f32 %v925_v56, %v2848_v36  ;;  %v1130_v51 = vpop.f32.mrf.mxu1 }
 0x240   :  { %v1159_v53 = vadd.f32 %v1071_v33, %v877_v1  ;;  %v1160_v21 = vadd.f32 %v1120_v4, %v926_v61  ;;  %v2198_v1 = vld [vmem:[%s3087_s5 + $0xb8] sm:$0xff] }
 0x241   :  { %1446 = vmatpush.bf16.msra.mxu2 %v2198_v1  ;;  %v2191_v1 = vld [vmem:[%s3087_s5 + $0x80] sm:$0xff] }
 0x242   :  { %v1187_v34 = vmax.f32 %v1155_v27, %v1159_v53  ;;  %v1188_v13 = vmax.f32 %v1156_v28, %v1160_v21  ;;  %v1083_v21 = vpop.f32.mrf.mxu0  ;;  %v2197_v28 = vld [vmem:[%s3087_s5 + $0xb0] sm:$0xff] }
 0x244   :  { %v1191_v4 = vmax.f32 %v1187_v34, %v1188_v13 }
 0x245   :  { %v878_v6 = vpop.f32.mrf.mxu2  ;;  %v927_v36 = vpop.f32.mrf.mxu3  ;;  %1447 = vmatpush.bf16.msra.mxu2 %v2197_v28 }
 0x246   :  { %v879_v33 = vadd.f32 %v878_v6, %v2850_v37  ;;  %v928_v29 = vadd.f32 %v927_v36, %v2852_v57  ;;  %v1197_v37 = vadd.f32 %v2972_v11, %v1191_v4  ;;  %v1132_v27 = vpop.f32.mrf.mxu1 }
 0x248   :  { %v1161_v35 = vadd.f32 %v1073_v54, %v879_v33  ;;  %v1162_v40 = vadd.f32 %v1122_v55, %v928_v29  ;;  %v1199_v55 = vmax.f32 %v1197_v37, 0.0 }
 0x249   :  { %1448 = vmatpush.bf16.msra.mxu2 %v2196_v2 }
 0x24a   :  { %v1189_v46 = vmax.f32 %v1157_v8, %v1161_v35  ;;  %v1190_v47 = vmax.f32 %v1158_v17, %v1162_v40  ;;  %v2195_v8 = vld [vmem:[%s3087_s5 + $0xa0] sm:$0xff]  ;;  %v1086_v17 = vpop.f32.mrf.mxu0 }
 0x24c   :  { %v1192_v57 = vmax.f32 %v1189_v46, %v1190_v47 }
 0x24d   :  { %v881_v31 = vpop.f32.mrf.mxu2  ;;  %v930_v48 = vpop.f32.mrf.mxu3  ;;  %1449 = vmatpush.bf16.msra.mxu2 %v2195_v8 }
 0x24e   :  { %v1198_v54 = vadd.f32 %v2972_v11, %v1192_v57  ;;  %v882_v13 = vadd.f32 %v881_v31, %v2856_v9  ;;  %v931_v41 = vadd.f32 %v930_v48, %v2858_v10  ;;  %v1135_v4 = vpop.f32.mrf.mxu1  ;;  %v2193_v31 = vld [vmem:[%s3087_s5 + $0x90] sm:$0xff] }
 0x250   :  { %v1200_v56 = vmax.f32 %v1198_v54, 0.0  ;;  %v1163_v35 = vadd.f32 %v2950_v22, %v882_v13  ;;  %v1164_v40 = vadd.f32 %v2952_v23, %v931_v41 }
 0x251   :  { %1450 = vmatpush.bf16.msra.mxu2 %v2194_v45 }
 0x252   :  { %v1201_v63 = vpack.c.bf16 %v1200_v56, %v1199_v55 }
 0x254   :  { %1364 = vmatmul.bf16.vlgmr.msrb.gmra.mxu3 %v1201_v63 }
 0x255   :  { %v883_v61 = vpop.f32.mrf.mxu2  ;;  %v932_v53 = vpop.f32.mrf.mxu3  ;;  %1451 = vmatpush.bf16.msra.mxu2 %v2193_v31 }
 0x256   :  { %v884_v9 = vadd.f32 %v883_v61, %v2860_v58  ;;  %v933_v10 = vadd.f32 %v932_v53, %v2862_v43  ;;  %v1137_v54 = vpop.f32.mrf.mxu1  ;;  %v2206_v53 = vld [vmem:[%s3087_s5 + $0xf8] sm:$0xff] }
 0x257   :  { %1538 = vmatpush.bf16.msra.mxu3 %v2206_v53 }
 0x258   :  { %v1165_v22 = vadd.f32 %v2959_v0, %v884_v9  ;;  %v1166_v23 = vadd.f32 %v2961_v19, %v933_v10  ;;  %v2192_v0 = vld [vmem:[%s3087_s5 + $0x88] sm:$0xff]  ;;  %v2203_v10 = vld [vmem:[%s3087_s5 + $0xe0] sm:$0xff] }
 0x259   :  { %1452 = vmatpush.bf16.msra.mxu2 %v2192_v0  ;;  %v2199_v0 = vld [vmem:[%s3087_s5 + $0xc0] sm:$0xff] }
 0x25d   :  { %v886_v5 = vpop.f32.mrf.mxu2  ;;  %v935_v34 = vpop.f32.mrf.mxu3  ;;  %1453 = vmatpush.bf16.msra.mxu2 %v2191_v1 }
 0x25e   :  { %v887_v6 = vadd.f32 %v886_v5, %v2866_v50  ;;  %v936_v36 = vadd.f32 %v935_v34, %v2868_v44  ;;  %v1140_v2 = vpop.f32.mrf.mxu1  ;;  %v2205_v5 = vld [vmem:[%s3087_s5 + $0xf0] sm:$0xff]  ;;  %v2204_v34 = vld [vmem:[%s3087_s5 + $0xe8] sm:$0xff] }
 0x25f   :  { %1539 = vmatpush.bf16.msra.mxu3 %v2205_v5 }
 0x260   :  { %v1167_v33 = vadd.f32 %v1081_v49, %v887_v6  ;;  %v1168_v29 = vadd.f32 %v1130_v51, %v936_v36  ;;  %v1088_v51 = vpop.f32.mrf.mxu0 }
 0x262   :  { %v1218_v50 = vmax.f32 %v1163_v35, %v1167_v33  ;;  %v1219_v44 = vmax.f32 %v1164_v40, %v1168_v29 }
 0x263   :  { %1540 = vmatpush.bf16.msra.mxu3 %v2204_v34 }
 0x264   :  { %v1222_v58 = vmax.f32 %v1218_v50, %v1219_v44 }
 0x265   :  { %v888_v46 = vpop.f32.mrf.mxu2  ;;  %v937_v47 = vpop.f32.mrf.mxu3 }
 0x266   :  { %v889_v37 = vadd.f32 %v888_v46, %v2870_v12  ;;  %v938_v57 = vadd.f32 %v937_v47, %v2872_v14  ;;  %v1224_v12 = vadd.f32 %v2972_v11, %v1222_v58  ;;  %v1142_v35 = vpop.f32.mrf.mxu1 }
 0x267   :  { %1541 = vmatpush.bf16.msra.mxu3 %v2203_v10 }
 0x268   :  { %v1169_v39 = vadd.f32 %v1083_v21, %v889_v37  ;;  %v1170_v43 = vadd.f32 %v1132_v27, %v938_v57  ;;  %v1226_v62 = vmax.f32 %v1224_v12, 0.0  ;;  %v1091_v28 = vpop.f32.mrf.mxu0 }
 0x26a   :  { %v1220_v48 = vmax.f32 %v1165_v22, %v1169_v39  ;;  %v1221_v49 = vmax.f32 %v1166_v23, %v1170_v43 }
 0x26c   :  { %v1223_v14 = vmax.f32 %v1220_v48, %v1221_v49 }
 0x26d   :  { %v891_v19 = vpop.f32.mrf.mxu2  ;;  %v940_v55 = vpop.f32.mrf.mxu3 }
 0x26e   :  { %v1225_v56 = vadd.f32 %v2972_v11, %v1223_v14  ;;  %v892_v6 = vadd.f32 %v891_v19, %v2876_v30  ;;  %v941_v36 = vadd.f32 %v940_v55, %v2878_v15  ;;  %v1145_v39 = vpop.f32.mrf.mxu1 }
 0x270   :  { %v1227_v63 = vmax.f32 %v1225_v56, 0.0  ;;  %v1093_v8 = vpop.f32.mrf.mxu0  ;;  %v1171_v50 = vadd.f32 %v1086_v17, %v892_v6  ;;  %v1172_v44 = vadd.f32 %v1135_v4, %v941_v36 }
 0x272   :  { %v1228_v61 = vpack.c.bf16 %v1227_v63, %v1226_v62 }
 0x274   :  { %1302 = vmatmul.bf16.vlgmr.msrb.gmra.mxu2 %v1228_v61 }
 0x275   :  { %v893_v21 = vpop.f32.mrf.mxu2  ;;  %v942_v27 = vpop.f32.mrf.mxu3 }
 0x276   :  { %v894_v30 = vadd.f32 %v893_v21, %v2880_v20  ;;  %v943_v15 = vadd.f32 %v942_v27, %v2882_v59  ;;  %v2201_v59 = vld [vmem:[%s3087_s5 + $0xd0] sm:$0xff]  ;;  %v1147_v56 = vpop.f32.mrf.mxu1 }
 0x278   :  { %v1173_v17 = vadd.f32 %v1088_v51, %v894_v30  ;;  %v1174_v4 = vadd.f32 %v1137_v54, %v943_v15  ;;  %v1096_v58 = vpop.f32.mrf.mxu0 }
 0x27d   :  { %v896_v13 = vpop.f32.mrf.mxu2  ;;  %v945_v41 = vpop.f32.mrf.mxu3 }
 0x27e   :  { %v897_v33 = vadd.f32 %v896_v13, %v2886_v42  ;;  %v946_v29 = vadd.f32 %v945_v41, %v2888_v60  ;;  %v2202_v60 = vld [vmem:[%s3087_s5 + $0xd8] sm:$0xff]  ;;  %v1150_v61 = vpop.f32.mrf.mxu1 }
 0x27f   :  { %1542 = vmatpush.bf16.msra.mxu3 %v2202_v60 }
 0x280   :  { %v1175_v40 = vadd.f32 %v1091_v28, %v897_v33  ;;  %v1176_v9 = vadd.f32 %v1140_v2, %v946_v29  ;;  %v1098_v55 = vpop.f32.mrf.mxu0 }
 0x282   :  { %v1370_v45 = vmax.f32 %v1171_v50, %v1175_v40  ;;  %v1371_v42 = vmax.f32 %v1172_v44, %v1176_v9 }
 0x283   :  { %1543 = vmatpush.bf16.msra.mxu3 %v2201_v59 }
 0x284   :  { %v1374_v22 = vmax.f32 %v1370_v45, %v1371_v42 }
 0x285   :  { %v898_v46 = vpop.f32.mrf.mxu2  ;;  %v947_v47 = vpop.f32.mrf.mxu3 }
 0x286   :  { %v899_v37 = vadd.f32 %v898_v46, %v2896_v24  ;;  %v948_v57 = vadd.f32 %v947_v47, %v2898_v25  ;;  %v1376_v48 = vadd.f32 %v2972_v11, %v1374_v22  ;;  %v2200_v25 = vld [vmem:[%s3087_s5 + $0xc8] sm:$0xff]  ;;  %v1152_v10 = vpop.f32.mrf.mxu1 }
 0x287   :  { %1544 = vmatpush.bf16.msra.mxu3 %v2200_v25 }
 0x288   :  { %v1177_v23 = vadd.f32 %v1093_v8, %v899_v37  ;;  %v1178_v20 = vadd.f32 %v1142_v35, %v948_v57  ;;  %v1378_v12 = vmax.f32 %v1376_v48, 0.0  ;;  %v1101_v1 = vpop.f32.mrf.mxu0  ;;  %v14_v37 = vstv %s3090_s8 }
 0x289   :  { %15 = vst [vmem:[#allocation2] sm:$0x1] %v14_v37 }
 0x28a   :  { %v1372_v43 = vmax.f32 %v1173_v17, %v1177_v23  ;;  %v1373_v31 = vmax.f32 %v1174_v4, %v1178_v20 }
 0x28b   :  { %1545 = vmatpush.bf16.msra.mxu3 %v2199_v0 }
 0x28c   :  { %v1375_v24 = vmax.f32 %v1372_v43, %v1373_v31 }
 0x28d   :  { %v901_v49 = vpop.f32.mrf.mxu2  ;;  %v950_v51 = vpop.f32.mrf.mxu3 }
 0x28e   :  { %v1377_v54 = vadd.f32 %v2972_v11, %v1375_v24  ;;  %v902_v27 = vadd.f32 %v901_v49, %v2902_v7  ;;  %v951_v28 = vadd.f32 %v950_v51, %v2904_v26 }
 0x290   :  { %v1379_v14 = vmax.f32 %v1377_v54, 0.0  ;;  %v1179_v41 = vadd.f32 %v1096_v58, %v902_v27  ;;  %v1180_v6 = vadd.f32 %v1145_v39, %v951_v28  ;;  %v2219_v39 = vld [vmem:[%s3089_s7] ss:$0 sm:$0xff] }
 0x291   :  { %v2220_v0 = vld [vmem:[#allocation2] ss:$0 sm:$0xff] }
 0x292   :  { %v1380_v19 = vpack.c.bf16 %v1379_v14, %v1378_v12 }
 0x294   :  { %1454 = vmatmul.bf16.vlgmr.msra.gmra.mxu2 %v1380_v19 }
 0x295   :  { %v903_v62 = vpop.f32.mrf.mxu2  ;;  %v952_v63 = vpop.f32.mrf.mxu3 }
 0x296   :  { %v904_v36 = vadd.f32 %v903_v62, %v2912_v38  ;;  %v953_v33 = vadd.f32 %v952_v63, %v2914_v18 }
 0x298   :  { %v1181_v9 = vadd.f32 %v1098_v55, %v904_v36 }
 0x29d   :  { %v906_v53 = vpop.f32.mrf.mxu2  ;;  %v955_v21 = vpop.f32.mrf.mxu3 }
 0x29e   :  { %v907_v2 = vadd.f32 %v906_v53, %v2921_v3  ;;  %v956_v5 = vadd.f32 %v955_v21, %v2923_v16  ;;  %v1103_v3 = vpop.f32.mrf.mxu0  ;;  %v1182_v16 = vadd.f32 %v1147_v56, %v953_v33 }
 0x2a0   :  { %v1183_v34 = vadd.f32 %v1101_v1, %v907_v2  ;;  %v1184_v13 = vadd.f32 %v1150_v61, %v956_v5 }
 0x2a2   :  { %v1462_v29 = vmax.f32 %v1179_v41, %v1183_v34  ;;  %v1463_v8 = vmax.f32 %v1180_v6, %v1184_v13 }
 0x2a4   :  { %v1466_v50 = vmax.f32 %v1462_v29, %v1463_v8 }
 0x2a5   :  { %v908_v35 = vpop.f32.mrf.mxu2  ;;  %v957_v40 = vpop.f32.mrf.mxu3 }
 0x2a6   :  { %v909_v7 = vadd.f32 %v908_v35, %v2931_v52  ;;  %v958_v26 = vadd.f32 %v957_v40, %v2933_v32  ;;  %v1468_v38 = vadd.f32 %v2972_v11, %v1466_v50 }
 0x2a8   :  { %v1185_v44 = vadd.f32 %v1103_v3, %v909_v7  ;;  %v1186_v30 = vadd.f32 %v1152_v10, %v958_v26  ;;  %v1470_v60 = vmax.f32 %v1468_v38, 0.0 }
 0x2aa   :  { %v1464_v15 = vmax.f32 %v1181_v9, %v1185_v44  ;;  %v1465_v45 = vmax.f32 %v1182_v16, %v1186_v30 }
 0x2ac   :  { %v1467_v18 = vmax.f32 %v1464_v15, %v1465_v45 }
 0x2ae   :  { %v1469_v42 = vadd.f32 %v2972_v11, %v1467_v18  ;;  %v2218_v11 = vld [vmem:[%s3088_s6] ss:$0 sm:$0xff] }
 0x2b0   :  { %v1471_v46 = vmax.f32 %v1469_v42, 0.0 }
 0x2b2   :  { %v1472_v47 = vpack.c.bf16 %v1471_v46, %v1470_v60 }
 0x2b4   :  { %1546 = vmatmul.bf16.vlgmr.msra.gmra.mxu3 %v1472_v47 }
 0x2d7   :  { %v1365_v32 = vpop.f32.mrf.mxu3 }
 0x2df   :  { %v1367_v17 = vpop.f32.mrf.mxu3 }
 0x2f7   :  { %v1303_v52 = vpop.f32.mrf.mxu2 }
 0x2f8   :  { %v1366_v22 = vadd.f32 %v1365_v32, %v1303_v52 }
 0x2ff   :  { %v1305_v57 = vpop.f32.mrf.mxu2 }
 0x300   :  { %v1368_v31 = vadd.f32 %v1367_v17, %v1305_v57 }
 0x317   :  { %v1455_v4 = vpop.f32.mrf.mxu2 }
 0x318   :  { %v1460_v23 = vadd.f32 %v1455_v4, %v1366_v22 }
 0x31f   :  { %v1457_v43 = vpop.f32.mrf.mxu2 }
 0x320   :  { %v1461_v24 = vadd.f32 %v1457_v43, %v1368_v31 }
 0x337   :  { %v1547_v20 = vpop.f32.mrf.mxu3 }
 0x338   :  { %v1552_v59 = vadd.f32 %v1547_v20, %v1460_v23 }
 0x33a   :  { %v1558_v58 = vadd.f32 %v2218_v11, %v1552_v59 }
 0x33c   :  { %v1560_v48 = vmax.f32 %v1558_v58, 0.0 }
 0x33e   :  { %v1566_v25 = vmul.f32 %v2219_v39, %v1560_v48 }
 0x33f   :  { %v1549_v49 = vpop.f32.mrf.mxu3 }
 0x340   :  { %v1553_v51 = vadd.f32 %v1549_v49, %v1461_v24  ;;  %1568 = vadd.xlane.f32.xlu0 %v1566_v25 }
 0x342   :  { %v1559_v54 = vadd.f32 %v2218_v11, %v1553_v51 }
 0x344   :  { %v1561_v12 = vmax.f32 %v1559_v54, 0.0 }
 0x346   :  { %v1567_v14 = vmul.f32 %v2219_v39, %v1561_v12 }
 0x348   :  { %1570 = vadd.xlane.f32.xlu0 %v1567_v14 }
 0x3b3   :  { %v1569_v19 = vpop.xlane.xlu0 %1568 }
 0x3b4   :  { %v1576_v55 = vadd.f32 %v2220_v0, %v1569_v19 }
 0x3b6   :  { %1579 = vst.msk [vmem:[%s3091_s9] sm:$0xff] %vm1578_vm2, %v1576_v55 }
 0x3bb   :  { %v1571_v56 = vpop.xlane.xlu0 %1570 }
 0x3bc   :  { %v1577_v62 = vadd.f32 %v2220_v0, %v1571_v56 }
 0x3be   :  { %1580 = vst.msk [vmem:[%s3091_s9 + $0x8] sm:$0xff] %vm1578_vm2, %v1577_v62 }

</bundles_post_ra>
